<compile_context>
chip_gen: v7x
topology: tpu7x:2x2x1
jax: 0.10.0
libtpu: 0.0.40
codegen_flags: <defaults>
</compile_context>

<pallas_src>
import functools
import numpy as np
import jax
import jax.numpy as jnp
from jax.experimental import pallas as pl
from jax.experimental.pallas import tpu as pltpu

# ----------------------- FRAP configuration (the kwargs) -----------------------
PHASE_PAIRS = [[0, 4], [1, 5], [2, 6], [3, 7],
               [0, 1], [2, 3], [4, 5], [6, 7]]
NUM_PHASES = len(PHASE_PAIRS)          # oshape / action_space
NUM_MOVEMENTS = 8                      # M
DEMAND_SHAPE = 1
P_OUT = 4
D_OUT = 4
LANE_EMBED = 16
REL_EMBED = 4
CONV_CH = 20
SPAT = NUM_PHASES * (NUM_PHASES - 1)   # 56 spatial positions seen by the 1x1 convs


def build_comp_mask():
    """comp_mask[i, jj] = 1 if phase i and the jj-th other phase share no movement."""
    cm = np.zeros((NUM_PHASES, NUM_PHASES - 1), dtype=np.int32)
    for i in range(NUM_PHASES):
        jj = 0
        for j in range(NUM_PHASES):
            if i == j:
                continue
            share = len(set(PHASE_PAIRS[i]) & set(PHASE_PAIRS[j])) > 0
            cm[i, jj] = 0 if share else 1
            jj += 1
    return cm


COMP_MASK = build_comp_mask()


def build_selection_matrices():
    """Numpy constants so the pair/rotation/sum steps become matmuls.

    NOTE on `sel`: the PyTorch code does
        combined_demand = phase_demands[:, pair[0]]   # a *view*
        combined_demand += phase_demands[:, idx]      # in-place, mutates phase_demands
    i.e. later pairs see the already-mutated columns.  We reproduce that aliasing
    exactly by tracking each column as a linear combination of the originals.
    """
    M, P = NUM_MOVEMENTS, NUM_PHASES
    A = np.eye(M, dtype=np.float32)
    sel = np.zeros((P, M), dtype=np.float32)
    for k, pair in enumerate(PHASE_PAIRS):
        for idx in pair[1:]:
            A[pair[0]] = A[pair[0]] + A[idx]
        sel[k] = A[pair[0]] / float(len(pair))
    # Rotation: row r = i*(P-1)+jj holds cat(pairs[i], pairs[j]), j = jj-th index != i.
    rl = np.zeros((SPAT, P), dtype=np.float32)
    rr = np.zeros((SPAT, P), dtype=np.float32)
    r = 0
    for i in range(P):
        for j in range(P):
            if i == j:
                continue
            rl[r, i] = 1.0
            rr[r, j] = 1.0
            r += 1
    # Final sum over dim=2 (groups of P-1 rows).
    sumsel = np.zeros((P, SPAT), dtype=np.float32)
    for i in range(P):
        sumsel[i, i * (P - 1):(i + 1) * (P - 1)] = 1.0
    return sel, rl, rr, sumsel


SEL_NP, RL_NP, RR_NP, SUMSEL_NP = build_selection_matrices()


# ----------------------------- parameter init ----------------------------------
def init_params(key):
    ks = jax.random.split(key, 14)

    def w(k, shape, scale=0.4):
        return (scale * jax.random.normal(k, shape)).astype(jnp.float32)

    return dict(
        p_weight=w(ks[0], (2, P_OUT)),                            # nn.Embedding(2, 4)
        d_w=w(ks[1], (D_OUT, DEMAND_SHAPE)),                      # nn.Linear(1, 4)
        d_b=w(ks[2], (D_OUT,), 0.1),
        lane_w=w(ks[3], (LANE_EMBED, P_OUT + D_OUT)),             # nn.Linear(8, 16)
        lane_b=w(ks[4], (LANE_EMBED,), 0.1),
        lane_conv_w=w(ks[5], (CONV_CH, 2 * LANE_EMBED)),          # Conv2d(32, 20, 1x1)
        lane_conv_b=w(ks[6], (CONV_CH,), 0.1),
        rel_emb_w=w(ks[7], (2, REL_EMBED)),                       # nn.Embedding(2, 4)
        rel_conv_w=w(ks[8], (CONV_CH, REL_EMBED)),                # Conv2d(4, 20, 1x1)
        rel_conv_b=w(ks[9], (CONV_CH,), 0.1),
        hidden_w=w(ks[10], (CONV_CH, CONV_CH)),                   # Conv2d(20, 20, 1x1)
        hidden_b=w(ks[11], (CONV_CH,), 0.1),
        before_w=w(ks[12], (1, CONV_CH)),                         # Conv2d(20, 1, 1x1)
        before_b=w(ks[13], (1,), 0.1),
    )


# ------------------------------- Pallas kernel ----------------------------------
def frap_kernel(phase_ref, dem_ref,
                wdbd_ref, wlane_ref, wlconv_ref, whb_ref, wbb_ref,
                rel_ref, sel_ref, rl_ref, rr_ref, bsel_ref, sumt_ref,
                q_ref):
    f32 = jnp.float32
    phase = phase_ref[...]                                  # (TB*M, 4) sigmoid(embed)
    # demand Linear(1, 4) + sigmoid  (K=1 matmul written as broadcast multiply)
    wdbd = wdbd_ref[...]
    dem = jax.nn.sigmoid(dem_ref[...] * wdbd[0:1, :] + wdbd[1:2, :])        # (TB*M, 4)
    # lane_embedding Linear(8, 16) + relu (concat folded into split weight rows)
    wlane = wlane_ref[...]
    pd = jnp.maximum(
        jnp.dot(phase, wlane[0:P_OUT, :], preferred_element_type=f32)
        + jnp.dot(dem, wlane[P_OUT:P_OUT + D_OUT, :], preferred_element_type=f32)
        + wlane[P_OUT + D_OUT:P_OUT + D_OUT + 1, :], 0.0)                   # (TB*M, 16)
    # pair combination (block-diagonal constant, reproduces torch in-place aliasing)
    pairs = jnp.dot(sel_ref[...], pd, preferred_element_type=f32)           # (TB*P, 16)
    # lane_conv 1x1: run the channel matmuls on the 8 pair rows per batch element,
    # then expand to the 56 rotated rows with cheap 0/1 constant matmuls.
    wlconv = wlconv_ref[...]
    cl = jnp.dot(pairs, wlconv[0:LANE_EMBED, :], preferred_element_type=f32)
    cr = jnp.dot(pairs, wlconv[LANE_EMBED:2 * LANE_EMBED, :],
                 preferred_element_type=f32)                                # (TB*P, 20)
    lane = jnp.maximum(
        jnp.dot(rl_ref[...], cl, preferred_element_type=f32)
        + jnp.dot(rr_ref[...], cr, preferred_element_type=f32)
        + wlconv[2 * LANE_EMBED:2 * LANE_EMBED + 1, :], 0.0)                # (TB*56, 20)
    # relation branch precomputed in the wrapper (batch independent)
    comb = lane * rel_ref[...]                                              # (TB*56, 20)
    whb = whb_ref[...]
    hid = jnp.maximum(
        jnp.dot(comb, whb[0:CONV_CH, :], preferred_element_type=f32)
        + whb[CONV_CH:CONV_CH + 1, :], 0.0)                                 # (TB*56, 20)
    # before_merge 1x1 (out channels = 1): VPU multiply + lane reduce instead of an
    # N=1 matmul over 56 rows; bias folded in per spatial position.
    wbb = wbb_ref[...]
    v = jnp.sum(hid * wbb[0:1, :], axis=-1, keepdims=True) + wbb[1:2, 0:1]  # (TB*56, 1)
    # q[b, p] = sum over the (oshape-1) rotations of phase p -> lane-dense (TB, P)
    q_ref[...] = jnp.dot(bsel_ref[...], v * sumt_ref[...],
                         preferred_element_type=f32)                        # (TB, P)


# --------------------------------- wrapper --------------------------------------
def _batch_tile(batch):
    if batch <= 8:
        return batch, batch              # single grid step, whole batch
    tb = 8                               # multi-tile: tile must be a multiple of 8
    b_pad = ((batch + tb - 1) // tb) * tb
    return tb, b_pad


@functools.lru_cache(maxsize=None)
def _tile_constants(tb):
    eye = np.eye(tb, dtype=np.float32)
    sel_bd = np.kron(eye, SEL_NP)                                   # (tb*P,  tb*M)
    rl_bd = np.kron(eye, RL_NP)                                     # (tb*56, tb*P)
    rr_bd = np.kron(eye, RR_NP)                                     # (tb*56, tb*P)
    bsel_bd = np.kron(eye, np.ones((1, SPAT), dtype=np.float32))    # (tb,    tb*56)
    sumt = np.tile(SUMSEL_NP.T, (tb, 1))                            # (tb*56, P)
    return sel_bd, rl_bd, rr_bd, bsel_bd, sumt


def vplight_pallas(x_phase, x_obss, x_con, prm):
    states = jnp.concatenate([x_phase, x_obss, x_con], axis=-1)     # (B, 1 + M)
    batch = states.shape[0]
    acts = states[:, 0].astype(jnp.int32)                           # one_hot=False path
    feats = states[:, 1:].astype(jnp.float32)                       # (B, M)

    # extended one-hot action over movements (the per-batch python scatter in torch)
    pp = jnp.asarray(PHASE_PAIRS, dtype=jnp.int32)
    chosen = pp[acts]                                               # (B, 2)
    ext = jnp.maximum(jax.nn.one_hot(chosen[:, 0], NUM_MOVEMENTS, dtype=jnp.int32),
                      jax.nn.one_hot(chosen[:, 1], NUM_MOVEMENTS, dtype=jnp.int32))
    phase_emb = jax.nn.sigmoid(prm['p_weight'][ext])                # (B, M, 4)

    tb, b_pad = _batch_tile(batch)
    num_tiles = b_pad // tb
    if b_pad != batch:
        pad = b_pad - batch
        phase_emb = jnp.pad(phase_emb, ((0, pad), (0, 0), (0, 0)))
        feats = jnp.pad(feats, ((0, pad), (0, 0)))
    phase_flat = phase_emb.reshape(b_pad * NUM_MOVEMENTS, P_OUT)
    dem_flat = feats.reshape(b_pad * NUM_MOVEMENTS, DEMAND_SHAPE)

    # ---- batch-independent relation branch, hoisted out of the kernel ----
    relemb = jax.nn.relu(prm['rel_emb_w'][jnp.asarray(COMP_MASK)]).reshape(SPAT, REL_EMBED)
    rel56 = jax.nn.relu(relemb @ prm['rel_conv_w'].T + prm['rel_conv_b'])   # (56, 20)
    rel_tiled = jnp.tile(rel56, (tb, 1))                                    # (tb*56, 20)

    # ---- packed weights (weight rows first, bias as the trailing row) ----
    wdbd = jnp.concatenate([prm['d_w'].T, prm['d_b'][None, :]], axis=0)            # (2, 4)
    wlane = jnp.concatenate([prm['lane_w'].T, prm['lane_b'][None, :]], axis=0)     # (9, 16)
    wlconv = jnp.concatenate([prm['lane_conv_w'].T,
                              prm['lane_conv_b'][None, :]], axis=0)                # (33, 20)
    whb = jnp.concatenate([prm['hidden_w'].T, prm['hidden_b'][None, :]], axis=0)   # (21, 20)
    wbb = jnp.concatenate([prm['before_w'],
                           jnp.broadcast_to(prm['before_b'][None, :],
                                            (1, CONV_CH))], axis=0)                # (2, 20)

    sel_bd, rl_bd, rr_bd, bsel_bd, sumt = (jnp.asarray(c) for c in _tile_constants(tb))

    weights = [wdbd, wlane, wlconv, whb, wbb,
               rel_tiled, sel_bd, rl_bd, rr_bd, bsel_bd, sumt]

    in_specs = [
        pl.BlockSpec((tb * NUM_MOVEMENTS, P_OUT), lambda b: (b, 0)),
        pl.BlockSpec((tb * NUM_MOVEMENTS, DEMAND_SHAPE), lambda b: (b, 0)),
    ] + [pl.BlockSpec(tuple(w.shape), lambda b: (0, 0)) for w in weights]
    out_spec = pl.BlockSpec((tb, NUM_PHASES), lambda b: (b, 0))

    q = pl.pallas_call(
        frap_kernel,
        out_shape=jax.ShapeDtypeStruct((b_pad, NUM_PHASES), jnp.float32),
        grid_spec=pltpu.PrefetchScalarGridSpec(
            num_scalar_prefetch=0,
            grid=(num_tiles,),
            in_specs=in_specs,
            out_specs=out_spec),
        compiler_params=pltpu.CompilerParams(
            dimension_semantics=("parallel",)),
    )(phase_flat, dem_flat, *weights)
    return q[:batch]                                                # (B, oshape)


# --------------------------- pure-JAX reference ----------------------------------
def vplight_reference(x_phase, x_obss, x_con, prm):
    states = jnp.concatenate([x_phase, x_obss, x_con], axis=-1)
    B = states.shape[0]
    acts = states[:, 0].astype(jnp.int32)
    feats = states[:, 1:].astype(jnp.float32)
    pp = jnp.asarray(PHASE_PAIRS, dtype=jnp.int32)
    chosen = pp[acts]
    ext = jnp.maximum(jax.nn.one_hot(chosen[:, 0], NUM_MOVEMENTS, dtype=jnp.int32),
                      jax.nn.one_hot(chosen[:, 1], NUM_MOVEMENTS, dtype=jnp.int32))
    phase_emb = jax.nn.sigmoid(prm['p_weight'][ext])
    dem = jax.nn.sigmoid(feats[:, :, None] @ prm['d_w'].T + prm['d_b'])
    lane_in = jnp.concatenate([phase_emb, dem], axis=-1)
    pd = jax.nn.relu(lane_in @ prm['lane_w'].T + prm['lane_b'])     # (B, M, 16)
    # emulate the torch in-place view aliasing of the pair loop
    pairs = []
    for pair in PHASE_PAIRS:
        for idx in pair[1:]:
            pd = pd.at[:, pair[0]].add(pd[:, idx])
        pairs.append(pd[:, pair[0]] / float(len(pair)))
    rotated = []
    P = len(pairs)
    for i in range(P):
        for j in range(P):
            if i != j:
                rotated.append(jnp.concatenate([pairs[i], pairs[j]], -1))
    rot = jnp.stack(rotated, 1).reshape(B, P, P - 1, 2 * LANE_EMBED)
    lane = jax.nn.relu(rot @ prm['lane_conv_w'].T + prm['lane_conv_b'])
    relemb = jax.nn.relu(prm['rel_emb_w'][jnp.asarray(COMP_MASK)])
    rel = jax.nn.relu(relemb @ prm['rel_conv_w'].T + prm['rel_conv_b'])
    comb = lane * rel
    hid = jax.nn.relu(comb @ prm['hidden_w'].T + prm['hidden_b'])
    out = hid @ prm['before_w'].T + prm['before_b']
    return out[..., 0].sum(-1)


# ------------------------------------ main ---------------------------------------
if __name__ == "__main__":
    key = jax.random.PRNGKey(0)
    kp, k1, k2, k3 = jax.random.split(key, 4)
    prm = init_params(kp)

    B = 4
    # obs = (x_phase, x_obss, x_con); concatenated -> (B, 1 + num_movements)
    x_phase = jax.random.randint(k1, (B, 1), 0, NUM_PHASES).astype(jnp.float32)
    x_obss = jax.random.uniform(k2, (B, 5), dtype=jnp.float32)
    x_con = jax.random.uniform(k3, (B, NUM_MOVEMENTS - 5), dtype=jnp.float32)

    fwd = jax.jit(functools.partial(vplight_pallas, prm=prm))
    q = fwd(x_phase, x_obss, x_con)
    jax.block_until_ready(q)
    assert q.shape == (B, NUM_PHASES)

    q_ref = vplight_reference(x_phase, x_obss, x_con, prm)
    q_np, qref_np = np.asarray(q), np.asarray(q_ref)
    # Both kernel and reference run MXU-default (bf16-input) matmuls now, with
    # different factorizations, so compare relative to the output scale.
    scale = max(1.0, float(np.max(np.abs(qref_np))))
    np.testing.assert_allclose(q_np, qref_np, rtol=5e-2, atol=5e-2 * scale)
    print("KERNEL_OK")
</pallas_src>

<mosaic_0001>
module attributes {stable_mosaic.version = 11 : i64} {
  func.func @frap_kernel(%arg0: i32, %arg1: memref<32x4xf32, #tpu.memory_space<vmem>>, %arg2: memref<32x1xf32, #tpu.memory_space<vmem>>, %arg3: memref<2x4xf32, #tpu.memory_space<vmem>>, %arg4: memref<9x16xf32, #tpu.memory_space<vmem>>, %arg5: memref<33x20xf32, #tpu.memory_space<vmem>>, %arg6: memref<21x20xf32, #tpu.memory_space<vmem>>, %arg7: memref<2x20xf32, #tpu.memory_space<vmem>>, %arg8: memref<224x20xf32, #tpu.memory_space<vmem>>, %arg9: memref<32x32xf32, #tpu.memory_space<vmem>>, %arg10: memref<224x32xf32, #tpu.memory_space<vmem>>, %arg11: memref<224x32xf32, #tpu.memory_space<vmem>>, %arg12: memref<4x224xf32, #tpu.memory_space<vmem>>, %arg13: memref<224x8xf32, #tpu.memory_space<vmem>>, %arg14: memref<4x8xf32, #tpu.memory_space<vmem>>) attributes {dimension_semantics = [#tpu.dimension_semantics<parallel>], iteration_bounds = array<i64: 1>, scalar_prefetch = 0 : i64, scratch_operands = 0 : i64, tpu.core_type = #tpu.core_type<tc>, window_params = [{transform_indices = @transform_0, window_bounds = array<i64: 32, 4>}, {transform_indices = @transform_1, window_bounds = array<i64: 32, 1>}, {pipeline_mode = #tpu.pipeline_mode<synchronous>, transform_indices = @transform_2, window_bounds = array<i64: 2, 4>}, {pipeline_mode = #tpu.pipeline_mode<synchronous>, transform_indices = @transform_3, window_bounds = array<i64: 9, 16>}, {pipeline_mode = #tpu.pipeline_mode<synchronous>, transform_indices = @transform_4, window_bounds = array<i64: 33, 20>}, {pipeline_mode = #tpu.pipeline_mode<synchronous>, transform_indices = @transform_5, window_bounds = array<i64: 21, 20>}, {pipeline_mode = #tpu.pipeline_mode<synchronous>, transform_indices = @transform_6, window_bounds = array<i64: 2, 20>}, {pipeline_mode = #tpu.pipeline_mode<synchronous>, transform_indices = @transform_7, window_bounds = array<i64: 224, 20>}, {pipeline_mode = #tpu.pipeline_mode<synchronous>, transform_indices = @transform_8, window_bounds = array<i64: 32, 32>}, {pipeline_mode = #tpu.pipeline_mode<synchronous>, transform_indices = @transform_9, window_bounds = array<i64: 224, 32>}, {pipeline_mode = #tpu.pipeline_mode<synchronous>, transform_indices = @transform_10, window_bounds = array<i64: 224, 32>}, {pipeline_mode = #tpu.pipeline_mode<synchronous>, transform_indices = @transform_11, window_bounds = array<i64: 4, 224>}, {pipeline_mode = #tpu.pipeline_mode<synchronous>, transform_indices = @transform_12, window_bounds = array<i64: 224, 8>}, {transform_indices = @transform_13, window_bounds = array<i64: 4, 8>}]} {
    %c0 = arith.constant 0 : index
    %c0_0 = arith.constant 0 : index
    %0 = vector.load %arg1[%c0, %c0_0] : memref<32x4xf32, #tpu.memory_space<vmem>>, vector<32x4xf32>
    %c0_1 = arith.constant 0 : index
    %c0_2 = arith.constant 0 : index
    %1 = vector.load %arg3[%c0_1, %c0_2] : memref<2x4xf32, #tpu.memory_space<vmem>>, vector<2x4xf32>
    %c0_3 = arith.constant 0 : index
    %c0_4 = arith.constant 0 : index
    %2 = vector.load %arg2[%c0_3, %c0_4] : memref<32x1xf32, #tpu.memory_space<vmem>>, vector<32x1xf32>
    %3 = vector.extract_strided_slice %1 {offsets = [0, 0], sizes = [1, 4], strides = [1, 1]} : vector<2x4xf32> to vector<1x4xf32>
    %4 = vector.broadcast %2 : vector<32x1xf32> to vector<32x4xf32>
    %5 = vector.broadcast %3 : vector<1x4xf32> to vector<32x4xf32>
    %6 = arith.mulf %4, %5 : vector<32x4xf32>
    %7 = vector.extract_strided_slice %1 {offsets = [1, 0], sizes = [1, 4], strides = [1, 1]} : vector<2x4xf32> to vector<1x4xf32>
    %8 = vector.broadcast %7 : vector<1x4xf32> to vector<32x4xf32>
    %9 = arith.addf %6, %8 : vector<32x4xf32>
    %10 = arith.negf %9 : vector<32x4xf32>
    %11 = math.exp %10 : vector<32x4xf32>
    %cst = arith.constant 1.000000e+00 : f32
    %12 = vector.broadcast %cst : f32 to vector<32x4xf32>
    %13 = arith.addf %12, %11 : vector<32x4xf32>
    %14 = arith.divf %12, %13 : vector<32x4xf32>
    %c0_5 = arith.constant 0 : index
    %c0_6 = arith.constant 0 : index
    %15 = vector.load %arg4[%c0_5, %c0_6] : memref<9x16xf32, #tpu.memory_space<vmem>>, vector<9x16xf32>
    %16 = vector.extract_strided_slice %15 {offsets = [0, 0], sizes = [4, 16], strides = [1, 1]} : vector<9x16xf32> to vector<4x16xf32>
    %cst_7 = arith.constant dense<0.000000e+00> : vector<32x16xf32>
    %17 = tpu.matmul %0, %16, %cst_7 {dimension_numbers = #tpu.dot_dimension_numbers<[1], [0], [0], [1], [0, 0, 1, 1], [], []>} : vector<32x4xf32>, vector<4x16xf32>, vector<32x16xf32> -> vector<32x16xf32>
    %18 = vector.extract_strided_slice %15 {offsets = [4, 0], sizes = [4, 16], strides = [1, 1]} : vector<9x16xf32> to vector<4x16xf32>
    %cst_8 = arith.constant dense<0.000000e+00> : vector<32x16xf32>
    %19 = tpu.matmul %14, %18, %cst_8 {dimension_numbers = #tpu.dot_dimension_numbers<[1], [0], [0], [1], [0, 0, 1, 1], [], []>} : vector<32x4xf32>, vector<4x16xf32>, vector<32x16xf32> -> vector<32x16xf32>
    %20 = arith.addf %17, %19 : vector<32x16xf32>
    %21 = vector.extract_strided_slice %15 {offsets = [8, 0], sizes = [1, 16], strides = [1, 1]} : vector<9x16xf32> to vector<1x16xf32>
    %22 = vector.broadcast %21 : vector<1x16xf32> to vector<32x16xf32>
    %23 = arith.addf %20, %22 : vector<32x16xf32>
    %cst_9 = arith.constant 0.000000e+00 : f32
    %24 = vector.broadcast %cst_9 : f32 to vector<32x16xf32>
    %25 = arith.maximumf %23, %24 : vector<32x16xf32>
    %c0_10 = arith.constant 0 : index
    %c0_11 = arith.constant 0 : index
    %26 = vector.load %arg9[%c0_10, %c0_11] : memref<32x32xf32, #tpu.memory_space<vmem>>, vector<32x32xf32>
    %cst_12 = arith.constant dense<0.000000e+00> : vector<32x16xf32>
    %27 = tpu.matmul %26, %25, %cst_12 {dimension_numbers = #tpu.dot_dimension_numbers<[1], [0], [0], [1], [0, 0, 1, 1], [], []>} : vector<32x32xf32>, vector<32x16xf32>, vector<32x16xf32> -> vector<32x16xf32>
    %c0_13 = arith.constant 0 : index
    %c0_14 = arith.constant 0 : index
    %28 = vector.load %arg5[%c0_13, %c0_14] : memref<33x20xf32, #tpu.memory_space<vmem>>, vector<33x20xf32>
    %29 = vector.extract_strided_slice %28 {offsets = [0, 0], sizes = [16, 20], strides = [1, 1]} : vector<33x20xf32> to vector<16x20xf32>
    %cst_15 = arith.constant dense<0.000000e+00> : vector<32x20xf32>
    %30 = tpu.matmul %27, %29, %cst_15 {dimension_numbers = #tpu.dot_dimension_numbers<[1], [0], [0], [1], [0, 0, 1, 1], [], []>} : vector<32x16xf32>, vector<16x20xf32>, vector<32x20xf32> -> vector<32x20xf32>
    %31 = vector.extract_strided_slice %28 {offsets = [16, 0], sizes = [16, 20], strides = [1, 1]} : vector<33x20xf32> to vector<16x20xf32>
    %cst_16 = arith.constant dense<0.000000e+00> : vector<32x20xf32>
    %32 = tpu.matmul %27, %31, %cst_16 {dimension_numbers = #tpu.dot_dimension_numbers<[1], [0], [0], [1], [0, 0, 1, 1], [], []>} : vector<32x16xf32>, vector<16x20xf32>, vector<32x20xf32> -> vector<32x20xf32>
    %c0_17 = arith.constant 0 : index
    %c0_18 = arith.constant 0 : index
    %33 = vector.load %arg10[%c0_17, %c0_18] : memref<224x32xf32, #tpu.memory_space<vmem>>, vector<224x32xf32>
    %cst_19 = arith.constant dense<0.000000e+00> : vector<224x20xf32>
    %34 = tpu.matmul %33, %30, %cst_19 {dimension_numbers = #tpu.dot_dimension_numbers<[1], [0], [0], [1], [0, 0, 1, 1], [], []>} : vector<224x32xf32>, vector<32x20xf32>, vector<224x20xf32> -> vector<224x20xf32>
    %c0_20 = arith.constant 0 : index
    %c0_21 = arith.constant 0 : index
    %35 = vector.load %arg11[%c0_20, %c0_21] : memref<224x32xf32, #tpu.memory_space<vmem>>, vector<224x32xf32>
    %cst_22 = arith.constant dense<0.000000e+00> : vector<224x20xf32>
    %36 = tpu.matmul %35, %32, %cst_22 {dimension_numbers = #tpu.dot_dimension_numbers<[1], [0], [0], [1], [0, 0, 1, 1], [], []>} : vector<224x32xf32>, vector<32x20xf32>, vector<224x20xf32> -> vector<224x20xf32>
    %37 = arith.addf %34, %36 : vector<224x20xf32>
    %38 = vector.extract_strided_slice %28 {offsets = [32, 0], sizes = [1, 20], strides = [1, 1]} : vector<33x20xf32> to vector<1x20xf32>
    %39 = vector.broadcast %38 : vector<1x20xf32> to vector<224x20xf32>
    %40 = arith.addf %37, %39 : vector<224x20xf32>
    %cst_23 = arith.constant 0.000000e+00 : f32
    %41 = vector.broadcast %cst_23 : f32 to vector<224x20xf32>
    %42 = arith.maximumf %40, %41 : vector<224x20xf32>
    %c0_24 = arith.constant 0 : index
    %c0_25 = arith.constant 0 : index
    %43 = vector.load %arg8[%c0_24, %c0_25] : memref<224x20xf32, #tpu.memory_space<vmem>>, vector<224x20xf32>
    %44 = arith.mulf %42, %43 : vector<224x20xf32>
    %c0_26 = arith.constant 0 : index
    %c0_27 = arith.constant 0 : index
    %45 = vector.load %arg6[%c0_26, %c0_27] : memref<21x20xf32, #tpu.memory_space<vmem>>, vector<21x20xf32>
    %46 = vector.extract_strided_slice %45 {offsets = [0, 0], sizes = [20, 20], strides = [1, 1]} : vector<21x20xf32> to vector<20x20xf32>
    %cst_28 = arith.constant dense<0.000000e+00> : vector<224x20xf32>
    %47 = tpu.matmul %44, %46, %cst_28 {dimension_numbers = #tpu.dot_dimension_numbers<[1], [0], [0], [1], [0, 0, 1, 1], [], []>} : vector<224x20xf32>, vector<20x20xf32>, vector<224x20xf32> -> vector<224x20xf32>
    %48 = vector.extract_strided_slice %45 {offsets = [20, 0], sizes = [1, 20], strides = [1, 1]} : vector<21x20xf32> to vector<1x20xf32>
    %49 = vector.broadcast %48 : vector<1x20xf32> to vector<224x20xf32>
    %50 = arith.addf %47, %49 : vector<224x20xf32>
    %cst_29 = arith.constant 0.000000e+00 : f32
    %51 = vector.broadcast %cst_29 : f32 to vector<224x20xf32>
    %52 = arith.maximumf %50, %51 : vector<224x20xf32>
    %c0_30 = arith.constant 0 : index
    %c0_31 = arith.constant 0 : index
    %53 = vector.load %arg7[%c0_30, %c0_31] : memref<2x20xf32, #tpu.memory_space<vmem>>, vector<2x20xf32>
    %54 = vector.extract_strided_slice %53 {offsets = [0, 0], sizes = [1, 20], strides = [1, 1]} : vector<2x20xf32> to vector<1x20xf32>
    %55 = vector.broadcast %54 : vector<1x20xf32> to vector<224x20xf32>
    %56 = arith.mulf %52, %55 : vector<224x20xf32>
    %cst_32 = arith.constant dense<0.000000e+00> : vector<224xf32>
    %57 = vector.multi_reduction <add>, %56, %cst_32 [1] : vector<224x20xf32> to vector<224xf32>
    %58 = vector.shape_cast %57 : vector<224xf32> to vector<224x1xf32>
    %59 = vector.extract_strided_slice %53 {offsets = [1, 0], sizes = [1, 1], strides = [1, 1]} : vector<2x20xf32> to vector<1x1xf32>
    %60 = vector.broadcast %59 : vector<1x1xf32> to vector<224x1xf32>
    %61 = arith.addf %58, %60 : vector<224x1xf32>
    %c0_33 = arith.constant 0 : index
    %c0_34 = arith.constant 0 : index
    %62 = vector.load %arg12[%c0_33, %c0_34] : memref<4x224xf32, #tpu.memory_space<vmem>>, vector<4x224xf32>
    %c0_35 = arith.constant 0 : index
    %c0_36 = arith.constant 0 : index
    %63 = vector.load %arg13[%c0_35, %c0_36] : memref<224x8xf32, #tpu.memory_space<vmem>>, vector<224x8xf32>
    %64 = vector.broadcast %61 : vector<224x1xf32> to vector<224x8xf32>
    %65 = arith.mulf %64, %63 : vector<224x8xf32>
    %cst_37 = arith.constant dense<0.000000e+00> : vector<4x8xf32>
    %66 = tpu.matmul %62, %65, %cst_37 {dimension_numbers = #tpu.dot_dimension_numbers<[1], [0], [0], [1], [0, 0, 1, 1], [], []>} : vector<4x224xf32>, vector<224x8xf32>, vector<4x8xf32> -> vector<4x8xf32>
    %c0_38 = arith.constant 0 : index
    %c0_39 = arith.constant 0 : index
    %67 = vector.load %arg14[%c0_38, %c0_39] : memref<4x8xf32, #tpu.memory_space<vmem>>, vector<4x8xf32>
    tpu.vector_store %arg14[%c0_38, %c0_39], %66 {strides = array<i32>} : memref<4x8xf32, #tpu.memory_space<vmem>>, vector<4x8xf32>,
    return
  }
  func.func @transform_0(%arg0: i32) -> (i32, i32) {
    %c0_i32 = arith.constant 0 : i32
    %c0_i32_0 = arith.constant 0 : i32
    return %arg0, %c0_i32 : i32, i32
  }
  func.func @transform_1(%arg0: i32) -> (i32, i32) {
    %c0_i32 = arith.constant 0 : i32
    %c0_i32_0 = arith.constant 0 : i32
    return %arg0, %c0_i32 : i32, i32
  }
  func.func @transform_2(%arg0: i32) -> (i32, i32) {
    %c0_i32 = arith.constant 0 : i32
    %c0_i32_0 = arith.constant 0 : i32
    %c0_i32_1 = arith.constant 0 : i32
    return %c0_i32, %c0_i32_0 : i32, i32
  }
  func.func @transform_3(%arg0: i32) -> (i32, i32) {
    %c0_i32 = arith.constant 0 : i32
    %c0_i32_0 = arith.constant 0 : i32
    %c0_i32_1 = arith.constant 0 : i32
    return %c0_i32, %c0_i32_0 : i32, i32
  }
  func.func @transform_4(%arg0: i32) -> (i32, i32) {
    %c0_i32 = arith.constant 0 : i32
    %c0_i32_0 = arith.constant 0 : i32
    %c0_i32_1 = arith.constant 0 : i32
    return %c0_i32, %c0_i32_0 : i32, i32
  }
  func.func @transform_5(%arg0: i32) -> (i32, i32) {
    %c0_i32 = arith.constant 0 : i32
    %c0_i32_0 = arith.constant 0 : i32
    %c0_i32_1 = arith.constant 0 : i32
    return %c0_i32, %c0_i32_0 : i32, i32
  }
  func.func @transform_6(%arg0: i32) -> (i32, i32) {
    %c0_i32 = arith.constant 0 : i32
    %c0_i32_0 = arith.constant 0 : i32
    %c0_i32_1 = arith.constant 0 : i32
    return %c0_i32, %c0_i32_0 : i32, i32
  }
  func.func @transform_7(%arg0: i32) -> (i32, i32) {
    %c0_i32 = arith.constant 0 : i32
    %c0_i32_0 = arith.constant 0 : i32
    %c0_i32_1 = arith.constant 0 : i32
    return %c0_i32, %c0_i32_0 : i32, i32
  }
  func.func @transform_8(%arg0: i32) -> (i32, i32) {
    %c0_i32 = arith.constant 0 : i32
    %c0_i32_0 = arith.constant 0 : i32
    %c0_i32_1 = arith.constant 0 : i32
    return %c0_i32, %c0_i32_0 : i32, i32
  }
  func.func @transform_9(%arg0: i32) -> (i32, i32) {
    %c0_i32 = arith.constant 0 : i32
    %c0_i32_0 = arith.constant 0 : i32
    %c0_i32_1 = arith.constant 0 : i32
    return %c0_i32, %c0_i32_0 : i32, i32
  }
  func.func @transform_10(%arg0: i32) -> (i32, i32) {
    %c0_i32 = arith.constant 0 : i32
    %c0_i32_0 = arith.constant 0 : i32
    %c0_i32_1 = arith.constant 0 : i32
    return %c0_i32, %c0_i32_0 : i32, i32
  }
  func.func @transform_11(%arg0: i32) -> (i32, i32) {
    %c0_i32 = arith.constant 0 : i32
    %c0_i32_0 = arith.constant 0 : i32
    %c0_i32_1 = arith.constant 0 : i32
    return %c0_i32, %c0_i32_0 : i32, i32
  }
  func.func @transform_12(%arg0: i32) -> (i32, i32) {
    %c0_i32 = arith.constant 0 : i32
    %c0_i32_0 = arith.constant 0 : i32
    %c0_i32_1 = arith.constant 0 : i32
    return %c0_i32, %c0_i32_0 : i32, i32
  }
  func.func @transform_13(%arg0: i32) -> (i32, i32) {
    %c0_i32 = arith.constant 0 : i32
    %c0_i32_0 = arith.constant 0 : i32
    return %arg0, %c0_i32 : i32, i32
  }
}

</mosaic_0001>

<bundles_post_ra>
// kernel: vplight_pallas.1
= control target key start
LH: loop header
LB: loop body
LE: loop exit
PB: predicated region body
PF: predicated region fallthrough
CT: control target
= control target key end

     0   :  { %18 = vsyncpa [#allocation3], 0  ;;  %s3602_s0 = inlined_call_operand.vmem [shape: f32[32,4], index: 0, kind: input, shape index: {}]   ;;  %s3603_s1 = inlined_call_operand.vmem [shape: f32[32,1], index: 1, kind: input, shape index: {}]   ;;  %s3604_s2 = inlined_call_operand.vmem [shape: f32[2,4], index: 2, kind: input, shape index: {}]   ;;  %s3605_s3 = inlined_call_operand.vmem [shape: f32[9,16], index: 3, kind: input, shape index: {}]   ;;  %s3606_s4 = inlined_call_operand.hbm [shape: f32[33,20], index: 4, kind: input, shape index: {}]   ;;  %s3607_s5 = inlined_call_operand.hbm [shape: f32[21,20], index: 5, kind: input, shape index: {}]   ;;  %s3608_s6 = inlined_call_operand.vmem [shape: f32[2,20], index: 6, kind: input, shape index: {}]   ;;  %s3609_s7 = inlined_call_operand.vmem [shape: f32[224,20], index: 7, kind: input, shape index: {}]   ;;  %s3610_s8 = inlined_call_operand.vmem [shape: f32[32,32], index: 8, kind: input, shape index: {}]   ;;  %s3611_s9 = inlined_call_operand.vmem [shape: f32[224,32], index: 9, kind: input, shape index: {}]   ;;  %s3612_s10 = inlined_call_operand.vmem [shape: f32[224,32], index: 10, kind: input, shape index: {}]   ;;  %s3613_s11 = inlined_call_operand.vmem [shape: f32[4,224], index: 11, kind: input, shape index: {}]   ;;  %s3614_s12 = inlined_call_operand.vmem [shape: f32[224,8], index: 12, kind: input, shape index: {}]   ;;  %s3615_s13 = inlined_call_operand.hbm [shape: f32[4,8], index: 13, kind: output, shape index: {}]  }
   0x1   :  { %19 = vsyncpa [#allocation6], 0 }
   0x2   :  { %20 = vsyncpa [#allocation4], 0  ;;  %s2814_s25 = smov [#allocation2]   ;;  %s2742_s29 = scalar_lea.hbm %s3606_s4, 640 }
   0x3   :  { %s34_s26 = sshll.u32 %s2814_s25, 4  ;;  %p2743_p0 = scmp.ne.s32.totalorder %s3606_s4, %s2742_s29  ;;  %s35_s26 = int_to_ptr.vmem [resolvable:$true] %s34_s26 }
   0x4   :  { %p2746_p1 = scmp.lt.u32.totalorder %s2742_s29, %s3606_s4 }
   0x6   :  { %p2748_p2 = pnand %p2746_p1, %p2743_p0 }
   0x8   :  { %2751 = shalt.err (!%p2748_p2)
}
   0x9   :  { %s2752_s17 = scalar_lea.vmem %s35_s26, 640  ;;  %p2757_p4 = scmp.lt.s32.totalorder %s35_s26, %s35_s26 }
   0xa   :  { %p2753_p3 = scmp.ne.s32.totalorder %s35_s26, %s2752_s17  ;;  %p2758_p5 = scmp.lt.s32.totalorder %s2752_s17, %s2752_s17 }
   0xc   :  { %p2759_p6 = por %p2758_p5, %p2757_p4 }
   0xe   :  { %p2760_p7 = pnand %p2759_p6, %p2753_p3 }
  0x10   :  { %2763 = shalt.err (!%p2760_p7)
}
  0x11   :  { %s2815_s18 = smov 128   ;;  %s2816_s19 = smov 8  }
  0x12   :  { %40 = dma.hbm_to_vmem [thread:$0]  %s3606_s4, 640, %s35_s26, [#allocation3], %s2815_s18, %s2815_s18, %s2816_s19  }
  0x13   :  { %s2817_s22 = smov [#allocation5]   ;;  %s2764_s27 = scalar_lea.hbm %s3607_s5, 384 }
  0x14   :  { %s46_s23 = sshll.u32 %s2817_s22, 4  ;;  %p2765_p8 = scmp.ne.s32.totalorder %s3607_s5, %s2764_s27  ;;  %s47_s23 = int_to_ptr.vmem [resolvable:$true] %s46_s23 }
  0x15   :  { %p2768_p9 = scmp.lt.u32.totalorder %s2764_s27, %s3607_s5 }
  0x17   :  { %p2770_p10 = pnand %p2768_p9, %p2765_p8 }
  0x19   :  { %2773 = shalt.err (!%p2770_p10)
}
  0x1a   :  { %s2774_s15 = scalar_lea.vmem %s47_s23, 384  ;;  %p2779_p12 = scmp.lt.s32.totalorder %s47_s23, %s47_s23 }
  0x1b   :  { %p2775_p11 = scmp.ne.s32.totalorder %s47_s23, %s2774_s15  ;;  %p2780_p13 = scmp.lt.s32.totalorder %s2774_s15, %s2774_s15 }
  0x1d   :  { %p2781_p0 = por %p2780_p13, %p2779_p12 }
  0x1f   :  { %p2782_p1 = pnand %p2781_p0, %p2775_p11 }
  0x21   :  { %2785 = shalt.err (!%p2782_p1)
}
  0x22   :  { %52 = dma.hbm_to_vmem [thread:$0]  %s3607_s5, 384, %s47_s23, [#allocation6], %s2815_s18, %s2815_s18, %s2816_s19  }
  0x23   :  { %2808 = dma.done.wait [#allocation3], 640  }
  0x24   :  { %2809 = vsyncadd [#allocation3], 4294966656 }
  0x25   :  { %2810 = dma.done.wait [#allocation6], 384  }
  0x26   :  { %2811 = vsyncadd [#allocation6], 4294966912  ;;  %v2818_v0 = vmov 0   ;;  %v102_v1 = vlaneseq  ;;  %v80_v3 = vld [vmem:[%s3603_s1 + $0x10] sm:$0xff]  ;;  %v78_v4 = vld [vmem:[%s3603_s1] sm:$0xff]  ;;  %vm159_vm0 = vcmask 1043456  }
  0x27   :  { %2724 = vset.pattern.permute.xlu1 %v2818_v0  ;;  %2723 = vset.pattern.permute.xlu0 %v2818_v0  ;;  %v2927_v6 = vld [vmem:[%s3608_s6] sm:$0x3]  ;;  %v81_v7 = vld [vmem:[%s3603_s1 + $0x18] sm:$0xff]  ;;  %v79_v8 = vld [vmem:[%s3603_s1 + $0x8] sm:$0xff]  ;;  %vm146_vm1 = vcmask 31744   ;;  %vm362_vm2 = vcmask 261120  }
  0x28   :  { %v2915_v2 = vshrl.u32 %v102_v1, 7  ;;  %94 = vperm.xlu1 %2724, %v80_v3   ;;  %84 = vperm.xlu0 %2723, %v78_v4   ;;  %v142_v10 = vld [vmem:[%s3605_s3] sm:$0xff]  ;;  %v74_v45 = vld [vmem:[%s3602_s0 + $0x8] sm:$0xff]  ;;  %v75_v46 = vld [vmem:[%s3602_s0 + $0x10] sm:$0xff]  ;;  %vm465_vm3 = vcmask 130048   ;;  %vm1405_vm4 = vcmask 162816  }
  0x29   :  { %v145_v11 = vrot.slane %v142_v10, 4  ;;  %v77_v13 = vld [vmem:[%s3604_s2] sm:$0x3]  ;;  %v76_v47 = vld [vmem:[%s3602_s0 + $0x18] sm:$0xff]  ;;  %v2179_v52 = vld [vmem:[%s3605_s3 + $0x8] ss:$0 sm:$0xff] }
  0x2a   :  { %v112_v5 = vsub.s32 1, %v2915_v2  ;;  %v104_v12 = vsub.s32 0, %v2915_v2  ;;  %v73_v43 = vld [vmem:[%s3602_s0] sm:$0xff]  ;;  %v462_v49 = vld [vmem:[#allocation2 + $0x10] sm:$0xff]  ;;  %v460_v1 = vld [vmem:[#allocation2] sm:$0xff]  ;;  %vm2074_vm5 = vcmask 785408  }
  0x2b   :  { %2404 = vmatprep.subr.msk.mxu0 %vm159_vm0, %v145_v11  ;;  %v358_v48 = vld [vmem:[%s3610_s8] sm:$0xff]  ;;  %v461_v3 = vld [vmem:[#allocation2 + $0x8] sm:$0xff]  ;;  %vm2147_vm6 = vcmask 60416  }
  0x2c   :  { %v2936_v9 = vrot.slane %v2927_v6, %v112_v5  ;;  %99 = vperm.xlu1 %2724, %v81_v7   ;;  %89 = vperm.xlu0 %2723, %v79_v8   ;;  %v105_v14 = vrot.slane %v77_v13, %v104_v12  ;;  %v113_v15 = vrot.slane %v77_v13, %v112_v5  ;;  %v463_v50 = vld [vmem:[#allocation2 + $0x18] sm:$0xff]  ;;  %v359_v8 = vld [vmem:[%s3610_s8 + $0x8] sm:$0xff] }
  0x2d   :  { %2405 = vmatpush3.msk.msra.mxu0 %vm159_vm0, %v145_v11  ;;  %2428 = vmatprep.mubr.msk.f32.mxu1 %vm362_vm2, %v358_v48  ;;  %v2614_v51 = vpack.c.bf16 %v463_v50, %v462_v49  ;;  %v2610_v7 = vpack.c.bf16 %v461_v3, %v460_v1  ;;  %v361_v11 = vld [vmem:[%s3610_s8 + $0x18] sm:$0xff]  ;;  %v696_v48 = vld [vmem:[%s3612_s10 + $0xa0] sm:$0xff]  ;;  %v697_v50 = vld [vmem:[%s3612_s10 + $0xa8] sm:$0xff] }
  0x2e   :  { %2412 = vmatprep.subr.msk.mxu0 %vm159_vm0, %v142_v10  ;;  %v684_v49 = vld [vmem:[%s3612_s10 + $0x40] sm:$0xff]  ;;  %v653_v1 = vld [vmem:[%s3611_s9 + $0x28] sm:$0xff]  ;;  %v654_v3 = vld [vmem:[%s3611_s9 + $0x30] sm:$0xff] }
  0xa7   :  { %v95_v16 = vpop.permute.xlu1 %94  ;;  %v85_v17 = vpop.permute.xlu0 %84 }
  0xa8   :  { %v108_v18 = vmul.f32 %v105_v14, %v95_v16  ;;  %v106_v19 = vmul.f32 %v105_v14, %v85_v17  ;;  %v688_v17 = vld [vmem:[%s3612_s10 + $0x60] sm:$0xff] }
  0xaa   :  { %v116_v20 = vadd.f32 %v113_v15, %v108_v18  ;;  %v114_v21 = vadd.f32 %v113_v15, %v106_v19  ;;  %v676_v18 = vld [vmem:[%s3612_s10] sm:$0xff] }
  0xab   :  { %v100_v22 = vpop.permute.xlu1 %99  ;;  %v90_v23 = vpop.permute.xlu0 %89 }
  0xac   :  { %v2167_v24 = vmul.f32 -1.442695, %v116_v20  ;;  %v2165_v25 = vmul.f32 -1.442695, %v114_v21  ;;  %v109_v26 = vmul.f32 %v105_v14, %v100_v22  ;;  %v107_v27 = vmul.f32 %v105_v14, %v90_v23 }
  0xae   :  { %2726 = vpow2.f32 %v2167_v24  ;;  %v117_v28 = vadd.f32 %v113_v15, %v109_v26  ;;  %v115_v29 = vadd.f32 %v113_v15, %v107_v27  ;;  %v1399_v26 = vld [vmem:[#allocation5 + $0x8] sm:$0xff] }
  0xaf   :  { %2728 = vpow2.f32 %v2165_v25  ;;  %v1398_v25 = vld [vmem:[#allocation5] sm:$0xff] }
  0xb0   :  { %v2168_v30 = vmul.f32 -1.442695, %v117_v28  ;;  %v2166_v31 = vmul.f32 -1.442695, %v115_v29 }
  0xb2   :  { %2730 = vpow2.f32 %v2168_v30 }
  0xb3   :  { %2732 = vpow2.f32 %v2166_v31 }
  0xb8   :  { %v2727_v32 = vpop.eup %2726 }
  0xb9   :  { %v2729_v33 = vpop.eup %2728  ;;  %v132_v35 = vadd.f32 1.0, %v2727_v32 }
  0xba   :  { %v130_v34 = vadd.f32 1.0, %v2729_v33  ;;  %v2634_v33 = vpack.c.bf16 %v1399_v26, %v1398_v25  ;;  %v673_v25 = vld [vmem:[%s3611_s9 + $0xc8] sm:$0xff]  ;;  %v674_v26 = vld [vmem:[%s3611_s9 + $0xd0] sm:$0xff] }
  0xbc   :  { %v2731_v36 = vpop.eup %2730  ;;  %2734 = vrcp.f32 %v130_v34  ;;  %v689_v34 = vld [vmem:[%s3612_s10 + $0x68] sm:$0xff] }
  0xbd   :  { %v2733_v37 = vpop.eup %2732  ;;  %2736 = vrcp.f32 %v132_v35  ;;  %v133_v39 = vadd.f32 1.0, %v2731_v36  ;;  %v677_v35 = vld [vmem:[%s3612_s10 + $0x8] sm:$0xff]  ;;  %v690_v36 = vld [vmem:[%s3612_s10 + $0x70] sm:$0xff] }
  0xbe   :  { %v131_v38 = vadd.f32 1.0, %v2733_v37  ;;  %v678_v37 = vld [vmem:[%s3612_s10 + $0x10] sm:$0xff] }
  0xc0   :  { %2738 = vrcp.f32 %v131_v38  ;;  %v691_v38 = vld [vmem:[%s3612_s10 + $0x78] sm:$0xff] }
  0xc1   :  { %2740 = vrcp.f32 %v133_v39  ;;  %v679_v39 = vld [vmem:[%s3612_s10 + $0x18] sm:$0xff] }
  0xc6   :  { %v2735_v40 = vpop.eup %2734 }
  0xc7   :  { %2406 = vmatprep.mubr.msk.f32.mxu0 %vm146_vm1, %v2735_v40  ;;  %v2737_v41 = vpop.eup %2736  ;;  %v692_v40 = vld [vmem:[%s3612_s10 + $0x80] sm:$0xff] }
  0xca   :  { %v2739_v42 = vpop.eup %2738 }
  0xcb   :  { %2407 = vmatmul.mubr.msk.f32.vlgmr.msra.gmra.mrb[0].mxu0 %vm146_vm1, %v2739_v42  ;;  %v2741_v44 = vpop.eup %2740  ;;  %v693_v42 = vld [vmem:[%s3612_s10 + $0x88] sm:$0xff] }
  0xcc   :  { %2409 = vmatprep.mubr.msk.f32.mxu0 %vm146_vm1, %v2737_v41  ;;  %2413 = vmatpush3.msk.msra.mxu0 %vm159_vm0, %v142_v10  ;;  %v360_v10 = vld [vmem:[%s3610_s8 + $0x10] sm:$0xff]  ;;  %v680_v41 = vld [vmem:[%s3612_s10 + $0x20] sm:$0xff] }
  0xcd   :  { %2615 = vmatprep.subr.bf16.mxu0 %v2614_v51 }
  0xcf   :  { %2410 = vmatmul.mubr.msk.f32.gmra.mrb[2].mxu0 %vm146_vm1, %v2741_v44  ;;  %v694_v44 = vld [vmem:[%s3612_s10 + $0x90] sm:$0xff] }
  0xd0   :  { %2414 = vmatprep.mubr.msk.f32.mxu0 %vm146_vm1, %v73_v43  ;;  %v681_v43 = vld [vmem:[%s3612_s10 + $0x28] sm:$0xff] }
  0xd3   :  { %2415 = vmatmul.mubr.msk.f32.vlgmr.msra.gmra.mrb[0].mxu0 %vm146_vm1, %v74_v45  ;;  %v682_v45 = vld [vmem:[%s3612_s10 + $0x30] sm:$0xff] }
  0xd4   :  { %2417 = vmatprep.mubr.msk.f32.mxu0 %vm146_vm1, %v75_v46  ;;  %2617 = vmatpush3.bf16.msra.mxu0 %v2614_v51  ;;  %v695_v46 = vld [vmem:[%s3612_s10 + $0x98] sm:$0xff]  ;;  %v685_v51 = vld [vmem:[%s3612_s10 + $0x48] sm:$0xff] }
  0xd7   :  { %2418 = vmatmul.mubr.msk.f32.gmra.mrb[2].mxu0 %vm146_vm1, %v76_v47  ;;  %v683_v47 = vld [vmem:[%s3612_s10 + $0x38] sm:$0xff] }
 0x1a6   :  { %v2416_v53 = vpop.f32.mrb[0].mxu0 }
 0x1a7   :  { %v351_v54 = vadd.f32 %v2416_v53, %v2179_v52  ;;  %v327_v55 = vpop.f32.mrb[1].mxu0  ;;  %v686_v53 = vld [vmem:[%s3612_s10 + $0x50] sm:$0xff] }
 0x1a8   :  { %v350_v56 = vadd.f32 %v2179_v52, %v327_v55  ;;  %v687_v55 = vld [vmem:[%s3612_s10 + $0x58] sm:$0xff] }
 0x1a9   :  { %v355_v57 = vmax.f32 %v351_v54, 0.0  ;;  %v699_v54 = vld [vmem:[%s3612_s10 + $0xb8] sm:$0xff] }
 0x1aa   :  { %v354_v58 = vmax.f32 %v350_v56, 0.0  ;;  %v2419_v59 = vpop.f32.mrb[2].mxu0  ;;  %v700_v56 = vld [vmem:[%s3612_s10 + $0xc0] sm:$0xff] }
 0x1ab   :  { %v353_v60 = vadd.f32 %v2419_v59, %v2179_v52  ;;  %v337_v61 = vpop.f32.mrb[3].mxu0  ;;  %v703_v59 = vld [vmem:[%s3612_s10 + $0xd8] sm:$0xff] }
 0x1ac   :  { %v352_v62 = vadd.f32 %v2179_v52, %v337_v61  ;;  %v2602_v63 = vpack.c.bf16 %v355_v57, %v354_v58  ;;  %v698_v52 = vld [vmem:[%s3612_s10 + $0xb0] sm:$0xff]  ;;  %v701_v57 = vld [vmem:[%s3612_s10 + $0xc8] sm:$0xff] }
 0x1ad   :  { %v357_v0 = vmax.f32 %v353_v60, 0.0  ;;  %v702_v58 = vld [vmem:[%s3612_s10 + $0xd0] sm:$0xff]  ;;  %v648_v60 = vld [vmem:[%s3611_s9] sm:$0xff]  ;;  %v649_v61 = vld [vmem:[%s3611_s9 + $0x8] sm:$0xff] }
 0x1ae   :  { %v356_v4 = vmax.f32 %v352_v62, 0.0  ;;  %2603 = vmatprep.subr.bf16.mxu1 %v2602_v63  ;;  %v650_v62 = vld [vmem:[%s3611_s9 + $0x10] sm:$0xff] }
 0x1af   :  { %2605 = vmatpush3.bf16.msra.mxu1 %v2602_v63  ;;  %v651_v63 = vld [vmem:[%s3611_s9 + $0x18] sm:$0xff] }
 0x1b0   :  { %v2606_v5 = vpack.c.bf16 %v357_v0, %v356_v4  ;;  %v652_v0 = vld [vmem:[%s3611_s9 + $0x20] sm:$0xff]  ;;  %v655_v4 = vld [vmem:[%s3611_s9 + $0x38] sm:$0xff] }
 0x1b2   :  { %2607 = vmatprep.subr.bf16.mxu1 %v2606_v5 }
 0x1b3   :  { %2609 = vmatpush3.bf16.msra.mxu1 %v2606_v5  ;;  %v656_v5 = vld [vmem:[%s3611_s9 + $0x40] sm:$0xff] }
 0x1b4   :  { %2611 = vmatprep.subr.bf16.mxu1 %v2610_v7 }
 0x1b6   :  { %2429 = vmatmul.mubr.msk.f32.vlgmr.msra.gmra.mrb[0].mxu1 %vm362_vm2, %v359_v8  ;;  %v658_v8 = vld [vmem:[%s3611_s9 + $0x50] sm:$0xff] }
 0x1b7   :  { %2431 = vmatprep.mubr.msk.f32.mxu1 %vm362_vm2, %v360_v10  ;;  %2613 = vmatpush3.bf16.msra.mxu1 %v2610_v7  ;;  %v657_v7 = vld [vmem:[%s3611_s9 + $0x48] sm:$0xff]  ;;  %v659_v10 = vld [vmem:[%s3611_s9 + $0x58] sm:$0xff] }
 0x1ba   :  { %2432 = vmatmul.mubr.msk.f32.gmra.mrb[2].mxu1 %vm362_vm2, %v361_v11  ;;  %v660_v11 = vld [vmem:[%s3611_s9 + $0x60] sm:$0xff] }
 0x289   :  { %v2430_v13 = vpop.f32.mrb[0].mxu1 }
 0x28a   :  { %v441_v14 = vpop.f32.mrb[1].mxu1 }
 0x28b   :  { %2438 = vmatprep.mubr.msk.f32.mxu1 %vm465_vm3, %v441_v14  ;;  %2448 = vmatprep.mubr.msk.f32.mxu0 %vm465_vm3, %v441_v14  ;;  %v662_v14 = vld [vmem:[%s3611_s9 + $0x70] sm:$0xff] }
 0x28c   :  { %2439 = vmatmul.mubr.msk.f32.vlgmr.msra.gmra.mrb[4].mxu1 %vm465_vm3, %v2430_v13  ;;  %2449 = vmatmul.mubr.msk.f32.vlgmr.msra.gmra.mrb[4].mxu0 %vm465_vm3, %v2430_v13  ;;  %v661_v13 = vld [vmem:[%s3611_s9 + $0x68] sm:$0xff] }
 0x28d   :  { %v2433_v15 = vpop.f32.mrb[2].mxu1 }
 0x28e   :  { %v451_v16 = vpop.f32.mrb[3].mxu1 }
 0x28f   :  { %2441 = vmatprep.mubr.msk.f32.mxu1 %vm465_vm3, %v451_v16  ;;  %2451 = vmatprep.mubr.msk.f32.mxu0 %vm465_vm3, %v451_v16  ;;  %v664_v16 = vld [vmem:[%s3611_s9 + $0x80] sm:$0xff] }
 0x290   :  { %2442 = vmatmul.mubr.msk.f32.gmra.mrb[6].mxu1 %vm465_vm3, %v2433_v15  ;;  %2452 = vmatmul.mubr.msk.f32.gmra.mrb[6].mxu0 %vm465_vm3, %v2433_v15  ;;  %v663_v15 = vld [vmem:[%s3611_s9 + $0x78] sm:$0xff] }
 0x291   :  { %2480 = vmatprep.mubr.msk.f32.mxu1 %vm362_vm2, %v688_v17  ;;  %2462 = vmatprep.mubr.msk.f32.mxu0 %vm362_vm2, %v676_v18  ;;  %v665_v17 = vld [vmem:[%s3611_s9 + $0x88] sm:$0xff]  ;;  %v666_v18 = vld [vmem:[%s3611_s9 + $0x90] sm:$0xff] }
 0x35f   :  { %v2440_v19 = vpop.f32.mrb[4].mxu1  ;;  %v2450_v20 = vpop.f32.mrb[4].mxu0 }
 0x360   :  { %v544_v21 = vpop.f32.mrb[5].mxu1  ;;  %v629_v22 = vpop.f32.mrb[5].mxu0 }
 0x361   :  { %v2626_v23 = vpack.c.bf16 %v2440_v19, %v544_v21  ;;  %v2618_v24 = vpack.c.bf16 %v2450_v20, %v629_v22  ;;  %v667_v19 = vld [vmem:[%s3611_s9 + $0x98] sm:$0xff]  ;;  %v668_v20 = vld [vmem:[%s3611_s9 + $0xa0] sm:$0xff]  ;;  %v669_v21 = vld [vmem:[%s3611_s9 + $0xa8] sm:$0xff] }
 0x362   :  { %v670_v22 = vld [vmem:[%s3611_s9 + $0xb0] sm:$0xff] }
 0x363   :  { %v2443_v27 = vpop.f32.mrb[6].mxu1  ;;  %v2453_v28 = vpop.f32.mrb[6].mxu0  ;;  %2619 = vmatprep.subr.bf16.mxu0 %v2618_v24  ;;  %2680 = vmatprep.subr.bf16.mxu1 %v2618_v24 }
 0x364   :  { %v554_v29 = vpop.f32.mrb[7].mxu1  ;;  %v639_v30 = vpop.f32.mrb[7].mxu0  ;;  %2621 = vmatpush3.bf16.msra.mxu0 %v2618_v24  ;;  %2682 = vmatpush3.bf16.msra.mxu1 %v2618_v24  ;;  %v672_v24 = vld [vmem:[%s3611_s9 + $0xc0] sm:$0xff] }
 0x365   :  { %v2630_v31 = vpack.c.bf16 %v2443_v27, %v554_v29  ;;  %v2622_v32 = vpack.c.bf16 %v2453_v28, %v639_v30  ;;  %v1403_v27 = vsub.s32 4, %v2915_v2  ;;  %v675_v28 = vld [vmem:[%s3611_s9 + $0xd8] sm:$0xff]  ;;  %v1400_v29 = vld [vmem:[#allocation5 + $0x10] sm:$0x1f] }
 0x367   :  { %2623 = vmatprep.subr.bf16.mxu0 %v2622_v32  ;;  %2681 = vmatprep.subr.bf16.mxu1 %v2622_v32  ;;  %v3215_v30 = vrot.slane %v1400_v29, %v1403_v27 }
 0x368   :  { %2625 = vmatpush3.bf16.msra.mxu0 %v2622_v32  ;;  %2683 = vmatpush3.bf16.msra.mxu1 %v2622_v32 }
 0x369   :  { %2627 = vmatprep.subr.bf16.mxu1 %v2626_v23  ;;  %2635 = vmatprep.subr.bf16.mxu0 %v2634_v33 }
 0x36b   :  { %2481 = vmatmul.mubr.msk.f32.vlgmr.msra.gmra.mrb[8].mxu1 %vm362_vm2, %v689_v34  ;;  %2463 = vmatmul.mubr.msk.f32.vlgmr.msra.gmra.mrb[8].mxu0 %vm362_vm2, %v677_v35 }
 0x36c   :  { %2629 = vmatpush3.bf16.msra.mxu1 %v2626_v23  ;;  %2483 = vmatprep.mubr.msk.f32.mxu1 %vm362_vm2, %v690_v36  ;;  %v671_v23 = vld [vmem:[%s3611_s9 + $0xb8] sm:$0xff] }
 0x36d   :  { %2631 = vmatprep.subr.bf16.mxu1 %v2630_v31  ;;  %2465 = vmatprep.mubr.msk.f32.mxu0 %vm362_vm2, %v678_v37 }
 0x36e   :  { %2637 = vmatpush3.bf16.msra.mxu0 %v2634_v33 }
 0x36f   :  { %2484 = vmatmul.mubr.msk.f32.gmra.mrb[10].mxu1 %vm362_vm2, %v691_v38  ;;  %2466 = vmatmul.mubr.msk.f32.gmra.mrb[10].mxu0 %vm362_vm2, %v679_v39 }
 0x370   :  { %2633 = vmatpush3.bf16.msra.mxu1 %v2630_v31  ;;  %2486 = vmatprep.mubr.msk.f32.mxu1 %vm362_vm2, %v692_v40 }
 0x371   :  { %2468 = vmatprep.mubr.msk.f32.mxu0 %vm362_vm2, %v680_v41  ;;  %2558 = vmatprep.subr.msk.mxu0 %vm159_vm0, %v1400_v29 }
 0x372   :  { %2559 = vmatpush3.msk.msra.mxu0 %vm159_vm0, %v1400_v29  ;;  %v1348_v29 = vld [vmem:[%s3609_s7 + $0x30] sm:$0xff] }
 0x373   :  { %2487 = vmatmul.mubr.msk.f32.gmra.mrb[12].mxu1 %vm362_vm2, %v693_v42  ;;  %2469 = vmatmul.mubr.msk.f32.gmra.mrb[12].mxu0 %vm362_vm2, %v681_v43  ;;  %v3223_v43 = vld [vmem:[#allocation2 + $0x20] ss:$0 sm:$0xff] }
 0x374   :  { %2489 = vmatprep.mubr.msk.f32.mxu1 %vm362_vm2, %v694_v44  ;;  %2471 = vmatprep.mubr.msk.f32.mxu0 %vm362_vm2, %v682_v45 }
 0x377   :  { %2490 = vmatmul.mubr.msk.f32.gmra.mrb[14].mxu1 %vm362_vm2, %v695_v46  ;;  %2472 = vmatmul.mubr.msk.f32.gmra.mrb[14].mxu0 %vm362_vm2, %v683_v47 }
 0x378   :  { %2492 = vmatprep.mubr.msk.f32.mxu1 %vm362_vm2, %v696_v48  ;;  %2474 = vmatprep.mubr.msk.f32.mxu0 %vm362_vm2, %v684_v49 }
 0x37b   :  { %2493 = vmatmul.mubr.msk.f32.gmra.mrb[16].mxu1 %vm362_vm2, %v697_v50  ;;  %2475 = vmatmul.mubr.msk.f32.gmra.mrb[16].mxu0 %vm362_vm2, %v685_v51 }
 0x37c   :  { %2495 = vmatprep.mubr.msk.f32.mxu1 %vm362_vm2, %v698_v52  ;;  %2477 = vmatprep.mubr.msk.f32.mxu0 %vm362_vm2, %v686_v53  ;;  %v1342_v52 = vld [vmem:[%s3609_s7] sm:$0xff] }
 0x37f   :  { %2496 = vmatmul.mubr.msk.f32.gmra.mrb[18].mxu1 %vm362_vm2, %v699_v54  ;;  %2478 = vmatmul.mubr.msk.f32.gmra.mrb[18].mxu0 %vm362_vm2, %v687_v55  ;;  %v1343_v55 = vld [vmem:[%s3609_s7 + $0x8] sm:$0xff] }
 0x380   :  { %2498 = vmatprep.mubr.msk.f32.mxu1 %vm362_vm2, %v700_v56 }
 0x383   :  { %2499 = vmatmul.mubr.msk.f32.gmra.mrb[20].mxu1 %vm362_vm2, %v701_v57 }
 0x384   :  { %2501 = vmatprep.mubr.msk.f32.mxu1 %vm362_vm2, %v702_v58 }
 0x387   :  { %2502 = vmatmul.mubr.msk.f32.gmra.mrb[22].mxu1 %vm362_vm2, %v703_v59 }
 0x388   :  { %2512 = vmatprep.mubr.msk.f32.mxu1 %vm362_vm2, %v648_v60  ;;  %v1345_v60 = vld [vmem:[%s3609_s7 + $0x18] sm:$0xff] }
 0x38b   :  { %2513 = vmatmul.mubr.msk.f32.vlgmr.msra.gmra.mrb[24].mxu1 %vm362_vm2, %v649_v61 }
 0x38c   :  { %2515 = vmatprep.mubr.msk.f32.mxu1 %vm362_vm2, %v650_v62 }
 0x38f   :  { %2516 = vmatmul.mubr.msk.f32.gmra.mrb[26].mxu1 %vm362_vm2, %v651_v63 }
 0x390   :  { %2518 = vmatprep.mubr.msk.f32.mxu1 %vm362_vm2, %v652_v0 }
 0x393   :  { %2519 = vmatmul.mubr.msk.f32.gmra.mrb[28].mxu1 %vm362_vm2, %v653_v1  ;;  %v1344_v1 = vld [vmem:[%s3609_s7 + $0x10] sm:$0xff] }
 0x394   :  { %2521 = vmatprep.mubr.msk.f32.mxu1 %vm362_vm2, %v654_v3 }
 0x397   :  { %2522 = vmatmul.mubr.msk.f32.gmra.mrb[30].mxu1 %vm362_vm2, %v655_v4 }
 0x398   :  { %2524 = vmatprep.mubr.msk.f32.mxu1 %vm362_vm2, %v656_v5 }
 0x39b   :  { %2525 = vmatmul.mubr.msk.f32.gmra.mrb[32].mxu1 %vm362_vm2, %v657_v7 }
 0x39c   :  { %2527 = vmatprep.mubr.msk.f32.mxu1 %vm362_vm2, %v658_v8 }
 0x39f   :  { %2528 = vmatmul.mubr.msk.f32.gmra.mrb[34].mxu1 %vm362_vm2, %v659_v10 }
 0x3a0   :  { %2530 = vmatprep.mubr.msk.f32.mxu1 %vm362_vm2, %v660_v11 }
 0x3a3   :  { %2531 = vmatmul.mubr.msk.f32.gmra.mrb[8].mxu1 %vm362_vm2, %v661_v13  ;;  %v1347_v13 = vld [vmem:[%s3609_s7 + $0x28] sm:$0xff] }
 0x3a4   :  { %2533 = vmatprep.mubr.msk.f32.mxu1 %vm362_vm2, %v662_v14 }
 0x3a7   :  { %2534 = vmatmul.mubr.msk.f32.gmra.mrb[10].mxu1 %vm362_vm2, %v663_v15 }
 0x3a8   :  { %2536 = vmatprep.mubr.msk.f32.mxu1 %vm362_vm2, %v664_v16 }
 0x3ab   :  { %2537 = vmatmul.mubr.msk.f32.gmra.mrb[12].mxu1 %vm362_vm2, %v665_v17  ;;  %v1346_v17 = vld [vmem:[%s3609_s7 + $0x20] sm:$0xff] }
 0x3ac   :  { %2539 = vmatprep.mubr.msk.f32.mxu1 %vm362_vm2, %v666_v18 }
 0x3af   :  { %2540 = vmatmul.mubr.msk.f32.gmra.mrb[14].mxu1 %vm362_vm2, %v667_v19 }
 0x3b0   :  { %2542 = vmatprep.mubr.msk.f32.mxu1 %vm362_vm2, %v668_v20 }
 0x3b3   :  { %2543 = vmatmul.mubr.msk.f32.gmra.mrb[16].mxu1 %vm362_vm2, %v669_v21 }
 0x3b4   :  { %2545 = vmatprep.mubr.msk.f32.mxu1 %vm362_vm2, %v670_v22 }
 0x3b7   :  { %2546 = vmatmul.mubr.msk.f32.gmra.mrb[18].mxu1 %vm362_vm2, %v671_v23 }
 0x3b8   :  { %2548 = vmatprep.mubr.msk.f32.mxu1 %vm362_vm2, %v672_v24 }
 0x3bb   :  { %2549 = vmatmul.mubr.msk.f32.gmra.mrb[20].mxu1 %vm362_vm2, %v673_v25  ;;  %v1349_v25 = vld [vmem:[%s3609_s7 + $0x38] sm:$0xff] }
 0x3bc   :  { %2551 = vmatprep.mubr.msk.f32.mxu1 %vm362_vm2, %v674_v26 }
 0x3bf   :  { %2552 = vmatmul.mubr.msk.f32.gmra.mrb[22].mxu1 %vm362_vm2, %v675_v28 }
 0x43e   :  { %v2464_v31 = vpop.f32.mrb[8].mxu0 }
 0x43f   :  { %v854_v32 = vpop.f32.mrb[9].mxu0 }
 0x442   :  { %v2467_v33 = vpop.f32.mrb[10].mxu0 }
 0x443   :  { %v864_v34 = vpop.f32.mrb[11].mxu0 }
 0x446   :  { %v2470_v35 = vpop.f32.mrb[12].mxu0 }
 0x447   :  { %v874_v36 = vpop.f32.mrb[13].mxu0 }
 0x44a   :  { %v2473_v37 = vpop.f32.mrb[14].mxu0 }
 0x44b   :  { %v884_v38 = vpop.f32.mrb[15].mxu0 }
 0x44e   :  { %v2476_v39 = vpop.f32.mrb[16].mxu0 }
 0x44f   :  { %v894_v40 = vpop.f32.mrb[17].mxu0 }
 0x452   :  { %v3219_v41 = vpop.f32.mrb[18].mxu0 }
 0x453   :  { %v3221_v42 = vpop.f32.mrb[19].mxu0 }
 0x45e   :  { %v2514_v44 = vpop.f32.mrb[24].mxu1 }
 0x45f   :  { %v1149_v45 = vadd.f32 %v2514_v44, %v2464_v31  ;;  %v1143_v46 = vpop.f32.mrb[25].mxu1 }
 0x460   :  { %v1144_v47 = vadd.f32 %v1143_v46, %v854_v32 }
 0x461   :  { %v1287_v48 = vadd.f32 %v3223_v43, %v1149_v45 }
 0x462   :  { %v1286_v49 = vadd.f32 %v3223_v43, %v1144_v47  ;;  %v2517_v50 = vpop.f32.mrb[26].mxu1 }
 0x463   :  { %v1315_v51 = vmax.f32 %v1287_v48, 0.0  ;;  %v1159_v53 = vadd.f32 %v2517_v50, %v2467_v33  ;;  %v1153_v54 = vpop.f32.mrb[27].mxu1 }
 0x464   :  { %v1314_v56 = vmax.f32 %v1286_v49, 0.0  ;;  %v1154_v57 = vadd.f32 %v1153_v54, %v864_v34 }
 0x465   :  { %v1289_v58 = vadd.f32 %v3223_v43, %v1159_v53  ;;  %v1371_v63 = vmul.f32 %v1343_v55, %v1315_v51  ;;  %v1353_v53 = vld [vmem:[%s3609_s7 + $0x58] sm:$0xff] }
 0x466   :  { %v1370_v59 = vmul.f32 %v1342_v52, %v1314_v56  ;;  %v1288_v61 = vadd.f32 %v3223_v43, %v1154_v57  ;;  %v2520_v62 = vpop.f32.mrb[28].mxu1 }
 0x467   :  { %v1317_v0 = vmax.f32 %v1289_v58, 0.0  ;;  %v1169_v3 = vadd.f32 %v2520_v62, %v2470_v35  ;;  %v1163_v4 = vpop.f32.mrb[29].mxu1 }
 0x468   :  { %v1316_v5 = vmax.f32 %v1288_v61, 0.0  ;;  %v1164_v7 = vadd.f32 %v1163_v4, %v874_v36  ;;  %2560 = vmatprep.mubr.msk.f32.mxu0 %vm1405_vm4, %v1370_v59  ;;  %v1354_v61 = vld [vmem:[%s3609_s7 + $0x60] sm:$0xff] }
 0x469   :  { %v1373_v8 = vmul.f32 %v1345_v60, %v1317_v0  ;;  %v1291_v10 = vadd.f32 %v3223_v43, %v1169_v3  ;;  %2561 = vmatmul.mubr.msk.f32.vlgmr.msra.gmra.mrb[20].mxu0 %vm1405_vm4, %v1371_v63 }
 0x46a   :  { %v1372_v11 = vmul.f32 %v1344_v1, %v1316_v5  ;;  %v1290_v14 = vadd.f32 %v3223_v43, %v1164_v7  ;;  %v2523_v15 = vpop.f32.mrb[30].mxu1  ;;  %v1355_v5 = vld [vmem:[%s3609_s7 + $0x68] sm:$0xff] }
 0x46b   :  { %v1319_v16 = vmax.f32 %v1291_v10, 0.0  ;;  %v1179_v18 = vadd.f32 %v2523_v15, %v2473_v37  ;;  %v1173_v19 = vpop.f32.mrb[31].mxu1  ;;  %v1356_v10 = vld [vmem:[%s3609_s7 + $0x70] sm:$0xff] }
 0x46c   :  { %v1318_v20 = vmax.f32 %v1290_v14, 0.0  ;;  %v1174_v21 = vadd.f32 %v1173_v19, %v884_v38  ;;  %2563 = vmatprep.mubr.msk.f32.mxu0 %vm1405_vm4, %v1372_v11  ;;  %v1351_v38 = vld [vmem:[%s3609_s7 + $0x48] sm:$0xff] }
 0x46d   :  { %v1375_v22 = vmul.f32 %v1347_v13, %v1319_v16  ;;  %v1293_v23 = vadd.f32 %v3223_v43, %v1179_v18  ;;  %2564 = vmatmul.mubr.msk.f32.gmra.mrb[22].mxu0 %vm1405_vm4, %v1373_v8  ;;  %v1357_v18 = vld [vmem:[%s3609_s7 + $0x78] sm:$0xff] }
 0x46e   :  { %v1374_v24 = vmul.f32 %v1346_v17, %v1318_v20  ;;  %v1292_v26 = vadd.f32 %v3223_v43, %v1174_v21  ;;  %v2526_v27 = vpop.f32.mrb[32].mxu1  ;;  %v1358_v21 = vld [vmem:[%s3609_s7 + $0x80] sm:$0xff] }
 0x46f   :  { %v1321_v28 = vmax.f32 %v1293_v23, 0.0  ;;  %v1189_v31 = vadd.f32 %v2526_v27, %v2476_v39  ;;  %v1183_v32 = vpop.f32.mrb[33].mxu1  ;;  %v1350_v39 = vld [vmem:[%s3609_s7 + $0x40] sm:$0xff] }
 0x470   :  { %v1320_v33 = vmax.f32 %v1292_v26, 0.0  ;;  %v1184_v34 = vadd.f32 %v1183_v32, %v894_v40  ;;  %2566 = vmatprep.mubr.msk.f32.mxu0 %vm1405_vm4, %v1374_v24  ;;  %v1360_v32 = vld [vmem:[%s3609_s7 + $0x90] sm:$0xff] }
 0x471   :  { %v1377_v35 = vmul.f32 %v1349_v25, %v1321_v28  ;;  %v1295_v36 = vadd.f32 %v3223_v43, %v1189_v31  ;;  %2567 = vmatmul.mubr.msk.f32.gmra.mrb[24].mxu0 %vm1405_vm4, %v1375_v22  ;;  %v1359_v28 = vld [vmem:[%s3609_s7 + $0x88] sm:$0xff] }
 0x472   :  { %v1376_v37 = vmul.f32 %v1348_v29, %v1320_v33  ;;  %v1294_v44 = vadd.f32 %v3223_v43, %v1184_v34  ;;  %v2529_v45 = vpop.f32.mrb[34].mxu1 }
 0x473   :  { %v1323_v46 = vmax.f32 %v1295_v36, 0.0  ;;  %v1199_v40 = vadd.f32 %v2529_v45, %v3219_v41  ;;  %v1193_v47 = vpop.f32.mrb[35].mxu1 }
 0x474   :  { %v1322_v48 = vmax.f32 %v1294_v44, 0.0  ;;  %v1194_v49 = vadd.f32 %v1193_v47, %v3221_v42  ;;  %2569 = vmatprep.mubr.msk.f32.mxu0 %vm1405_vm4, %v1376_v37  ;;  %v1352_v42 = vld [vmem:[%s3609_s7 + $0x50] sm:$0xff]  ;;  %v1361_v44 = vld [vmem:[%s3609_s7 + $0x98] sm:$0xff] }
 0x475   :  { %v1379_v50 = vmul.f32 %v1351_v38, %v1323_v46  ;;  %v1297_v51 = vadd.f32 %v3223_v43, %v1199_v40  ;;  %2570 = vmatmul.mubr.msk.f32.gmra.mrb[26].mxu0 %vm1405_vm4, %v1377_v35 }
 0x476   :  { %v1378_v52 = vmul.f32 %v1350_v39, %v1322_v48  ;;  %v1296_v54 = vadd.f32 %v3223_v43, %v1194_v49  ;;  %v2532_v55 = vpop.f32.mrb[8].mxu1  ;;  %v1362_v39 = vld [vmem:[%s3609_s7 + $0xa0] sm:$0xff] }
 0x477   :  { %v1325_v41 = vmax.f32 %v1297_v51, 0.0  ;;  %v1299_v56 = vadd.f32 %v2532_v55, %v3223_v43  ;;  %v1203_v57 = vpop.f32.mrb[9].mxu1  ;;  %v1364_v55 = vld [vmem:[%s3609_s7 + $0xb0] sm:$0xff] }
 0x478   :  { %v1324_v58 = vmax.f32 %v1296_v54, 0.0  ;;  %v1298_v59 = vadd.f32 %v3223_v43, %v1203_v57  ;;  %2572 = vmatprep.mubr.msk.f32.mxu0 %vm1405_vm4, %v1378_v52  ;;  %v1363_v52 = vld [vmem:[%s3609_s7 + $0xa8] sm:$0xff] }
 0x479   :  { %v1381_v60 = vmul.f32 %v1353_v53, %v1325_v41  ;;  %2573 = vmatmul.mubr.msk.f32.gmra.mrb[28].mxu0 %vm1405_vm4, %v1379_v50  ;;  %v1327_v1 = vmax.f32 %v1299_v56, 0.0 }
 0x47a   :  { %v1380_v62 = vmul.f32 %v1352_v42, %v1324_v58  ;;  %v1326_v63 = vmax.f32 %v1298_v59, 0.0  ;;  %v2535_v0 = vpop.f32.mrb[10].mxu1 }
 0x47b   :  { %v1301_v3 = vadd.f32 %v2535_v0, %v3223_v43  ;;  %v1213_v4 = vpop.f32.mrb[11].mxu1  ;;  %v1383_v14 = vmul.f32 %v1355_v5, %v1327_v1 }
 0x47c   :  { %v1382_v7 = vmul.f32 %v1354_v61, %v1326_v63  ;;  %v1300_v8 = vadd.f32 %v3223_v43, %v1213_v4  ;;  %2575 = vmatprep.mubr.msk.f32.mxu0 %vm1405_vm4, %v1380_v62  ;;  %v1366_v63 = vld [vmem:[%s3609_s7 + $0xc0] sm:$0xff] }
 0x47d   :  { %2576 = vmatmul.mubr.msk.f32.gmra.mrb[30].mxu0 %vm1405_vm4, %v1381_v60  ;;  %v1329_v15 = vmax.f32 %v1301_v3, 0.0  ;;  %v1365_v60 = vld [vmem:[%s3609_s7 + $0xb8] sm:$0xff] }
 0x47e   :  { %v1328_v11 = vmax.f32 %v1300_v8, 0.0  ;;  %v2538_v13 = vpop.f32.mrb[12].mxu1  ;;  %2578 = vmatprep.mubr.msk.f32.mxu0 %vm1405_vm4, %v1382_v7  ;;  %v1367_v8 = vld [vmem:[%s3609_s7 + $0xc8] sm:$0xff] }
 0x47f   :  { %v1303_v16 = vadd.f32 %v2538_v13, %v3223_v43  ;;  %v1223_v17 = vpop.f32.mrb[13].mxu1  ;;  %v1385_v24 = vmul.f32 %v1357_v18, %v1329_v15  ;;  %v1368_v13 = vld [vmem:[%s3609_s7 + $0xd0] sm:$0xff] }
 0x480   :  { %v1384_v19 = vmul.f32 %v1356_v10, %v1328_v11  ;;  %v1302_v20 = vadd.f32 %v3223_v43, %v1223_v17  ;;  %v1369_v17 = vld [vmem:[%s3609_s7 + $0xd8] sm:$0xff]  ;;  %s2820_s7 = smov [#allocation7]  }
 0x481   :  { %2579 = vmatmul.mubr.msk.f32.gmra.mrb[32].mxu0 %vm1405_vm4, %v1383_v14  ;;  %v1331_v25 = vmax.f32 %v1303_v16, 0.0  ;;  %s2155_s14 = sshll.u32 %s2820_s7, 4  ;;  %s2156_s14 = int_to_ptr.vmem [resolvable:$true] %s2155_s14 }
 0x482   :  { %v1330_v22 = vmax.f32 %v1302_v20, 0.0  ;;  %v2541_v23 = vpop.f32.mrb[14].mxu1  ;;  %2581 = vmatprep.mubr.msk.f32.mxu0 %vm1405_vm4, %v1384_v19  ;;  %v3370_v20 = vrot.slane %v2927_v6, %v104_v12  ;;  %p2791_p3 = scmp.lt.s32.totalorder %s2156_s14, %s2156_s14 }
 0x483   :  { %v1305_v26 = vadd.f32 %v2541_v23, %v3223_v43  ;;  %v1233_v27 = vpop.f32.mrb[15].mxu1  ;;  %v1387_v35 = vmul.f32 %v1359_v28, %v1331_v25 }
 0x484   :  { %v1386_v29 = vmul.f32 %v1358_v21, %v1330_v22  ;;  %v1304_v31 = vadd.f32 %v3223_v43, %v1233_v27 }
 0x485   :  { %2582 = vmatmul.mubr.msk.f32.gmra.mrb[34].mxu0 %vm1405_vm4, %v1385_v24  ;;  %v1333_v36 = vmax.f32 %v1305_v26, 0.0 }
 0x486   :  { %v1332_v33 = vmax.f32 %v1304_v31, 0.0  ;;  %v2544_v34 = vpop.f32.mrb[16].mxu1  ;;  %2584 = vmatprep.mubr.msk.f32.mxu0 %vm1405_vm4, %v1386_v29 }
 0x487   :  { %v1307_v37 = vadd.f32 %v2544_v34, %v3223_v43  ;;  %v1243_v38 = vpop.f32.mrb[17].mxu1  ;;  %v1389_v48 = vmul.f32 %v1361_v44, %v1333_v36 }
 0x488   :  { %v1388_v45 = vmul.f32 %v1360_v32, %v1332_v33  ;;  %v1306_v46 = vadd.f32 %v3223_v43, %v1243_v38 }
 0x489   :  { %2585 = vmatmul.mubr.msk.f32.gmra.mrb[36].mxu0 %vm1405_vm4, %v1387_v35  ;;  %v1335_v49 = vmax.f32 %v1307_v37, 0.0 }
 0x48a   :  { %v1334_v40 = vmax.f32 %v1306_v46, 0.0  ;;  %v2547_v47 = vpop.f32.mrb[18].mxu1  ;;  %2587 = vmatprep.mubr.msk.f32.mxu0 %vm1405_vm4, %v1388_v45 }
 0x48b   :  { %v1309_v50 = vadd.f32 %v2547_v47, %v3223_v43  ;;  %v1253_v51 = vpop.f32.mrb[19].mxu1  ;;  %v1391_v56 = vmul.f32 %v1363_v52, %v1335_v49 }
 0x48c   :  { %v1390_v53 = vmul.f32 %v1362_v39, %v1334_v40  ;;  %v1308_v54 = vadd.f32 %v3223_v43, %v1253_v51 }
 0x48d   :  { %2588 = vmatmul.mubr.msk.f32.gmra.mrb[38].mxu0 %vm1405_vm4, %v1389_v48  ;;  %v1337_v57 = vmax.f32 %v1309_v50, 0.0 }
 0x48e   :  { %v1336_v41 = vmax.f32 %v1308_v54, 0.0  ;;  %v2550_v42 = vpop.f32.mrb[20].mxu1  ;;  %2590 = vmatprep.mubr.msk.f32.mxu0 %vm1405_vm4, %v1390_v53 }
 0x48f   :  { %v1311_v58 = vadd.f32 %v2550_v42, %v3223_v43  ;;  %v1263_v59 = vpop.f32.mrb[21].mxu1  ;;  %v1393_v3 = vmul.f32 %v1365_v60, %v1337_v57 }
 0x490   :  { %v1392_v61 = vmul.f32 %v1364_v55, %v1336_v41  ;;  %v1310_v62 = vadd.f32 %v3223_v43, %v1263_v59 }
 0x491   :  { %2591 = vmatmul.mubr.msk.f32.gmra.mrb[40].mxu0 %vm1405_vm4, %v1391_v56  ;;  %v1339_v4 = vmax.f32 %v1311_v58, 0.0 }
 0x492   :  { %v1338_v0 = vmax.f32 %v1310_v62, 0.0  ;;  %v2553_v1 = vpop.f32.mrb[22].mxu1  ;;  %2593 = vmatprep.mubr.msk.f32.mxu0 %vm1405_vm4, %v1392_v61 }
 0x493   :  { %v1313_v5 = vadd.f32 %v2553_v1, %v3223_v43  ;;  %v1273_v7 = vpop.f32.mrb[23].mxu1  ;;  %v1395_v15 = vmul.f32 %v1367_v8, %v1339_v4 }
 0x494   :  { %v1394_v10 = vmul.f32 %v1366_v63, %v1338_v0  ;;  %v1312_v11 = vadd.f32 %v3223_v43, %v1273_v7 }
 0x495   :  { %2594 = vmatmul.mubr.msk.f32.gmra.mrb[42].mxu0 %vm1405_vm4, %v1393_v3  ;;  %v1341_v16 = vmax.f32 %v1313_v5, 0.0 }
 0x496   :  { %v1340_v14 = vmax.f32 %v1312_v11, 0.0  ;;  %2596 = vmatprep.mubr.msk.f32.mxu0 %vm1405_vm4, %v1394_v10 }
 0x497   :  { %v1397_v43 = vmul.f32 %v1369_v17, %v1341_v16 }
 0x498   :  { %v1396_v18 = vmul.f32 %v1368_v13, %v1340_v14 }
 0x499   :  { %2597 = vmatmul.mubr.msk.f32.gmra.mrb[44].mxu0 %vm1405_vm4, %v1395_v15 }
 0x49a   :  { %2599 = vmatprep.mubr.msk.f32.mxu0 %vm1405_vm4, %v1396_v18 }
 0x49d   :  { %2600 = vmatmul.mubr.msk.f32.gmra.mrb[46].mxu0 %vm1405_vm4, %v1397_v43 }
 0x53c   :  { %v2562_v19 = vpop.f32.mrb[20].mxu0 }
 0x53d   :  { %v1565_v21 = vadd.f32 %v2562_v19, %v3215_v30  ;;  %v1559_v22 = vpop.f32.mrb[21].mxu0 }
 0x53e   :  { %v1560_v23 = vadd.f32 %v1559_v22, %v3215_v30 }
 0x53f   :  { %v1699_v24 = vmax.f32 %v1565_v21, 0.0 }
 0x540   :  { %v1698_v25 = vmax.f32 %v1560_v23, 0.0  ;;  %v2565_v26 = vpop.f32.mrb[22].mxu0 }
 0x541   :  { %v1575_v27 = vadd.f32 %v2565_v26, %v3215_v30  ;;  %v1569_v28 = vpop.f32.mrb[23].mxu0  ;;  %v1732_v29 = vmul.f32 %v3370_v20, %v1699_v24 }
 0x542   :  { %v1570_v31 = vadd.f32 %v1569_v28, %v3215_v30  ;;  %v1731_v2 = vmul.f32 %v3370_v20, %v1698_v25 }
 0x543   :  { %v1701_v32 = vmax.f32 %v1575_v27, 0.0  ;;  %v1762_v6 = vsel %vm1405_vm4, %v1732_v29, 0.0 }
 0x544   :  { %v1700_v12 = vmax.f32 %v1570_v31, 0.0  ;;  %1763 = vadd.xlane.f32.xlu1 %v1762_v6  ;;  %v2568_v33 = vpop.f32.mrb[24].mxu0  ;;  %v1759_v34 = vsel %vm1405_vm4, %v1731_v2, 0.0 }
 0x545   :  { %v1585_v35 = vadd.f32 %v2568_v33, %v3215_v30  ;;  %v1579_v36 = vpop.f32.mrb[25].mxu0  ;;  %1760 = vadd.xlane.f32.xlu0 %v1759_v34  ;;  %v1734_v37 = vmul.f32 %v3370_v20, %v1701_v32 }
 0x546   :  { %v1580_v38 = vadd.f32 %v1579_v36, %v3215_v30  ;;  %v1733_v44 = vmul.f32 %v3370_v20, %v1700_v12 }
 0x547   :  { %v1703_v45 = vmax.f32 %v1585_v35, 0.0  ;;  %v1768_v46 = vsel %vm1405_vm4, %v1734_v37, 0.0 }
 0x548   :  { %v1702_v39 = vmax.f32 %v1580_v38, 0.0  ;;  %v2571_v40 = vpop.f32.mrb[26].mxu0  ;;  %v1765_v41 = vsel %vm1405_vm4, %v1733_v44, 0.0 }
 0x549   :  { %v1595_v47 = vadd.f32 %v2571_v40, %v3215_v30  ;;  %v1589_v48 = vpop.f32.mrb[27].mxu0  ;;  %1769 = vadd.xlane.f32.xlu0 %v1768_v46  ;;  %v1736_v49 = vmul.f32 %v3370_v20, %v1703_v45 }
 0x54a   :  { %v1590_v50 = vadd.f32 %v1589_v48, %v3215_v30  ;;  %v1735_v51 = vmul.f32 %v3370_v20, %v1702_v39 }
 0x54b   :  { %v1705_v52 = vmax.f32 %v1595_v47, 0.0  ;;  %v1774_v0 = vsel %vm1405_vm4, %v1736_v49, 0.0 }
 0x54c   :  { %v1704_v53 = vmax.f32 %v1590_v50, 0.0  ;;  %v2574_v54 = vpop.f32.mrb[28].mxu0  ;;  %v1771_v55 = vsel %vm1405_vm4, %v1735_v51, 0.0 }
 0x54d   :  { %v1605_v42 = vadd.f32 %v2574_v54, %v3215_v30  ;;  %v1599_v56 = vpop.f32.mrb[29].mxu0  ;;  %1772 = vadd.xlane.f32.xlu1 %v1771_v55  ;;  %1766 = vadd.xlane.f32.xlu0 %v1765_v41  ;;  %v1738_v57 = vmul.f32 %v3370_v20, %v1705_v52 }
 0x54e   :  { %v1600_v58 = vadd.f32 %v1599_v56, %v3215_v30  ;;  %v1737_v59 = vmul.f32 %v3370_v20, %v1704_v53 }
 0x54f   :  { %v1707_v60 = vmax.f32 %v1605_v42, 0.0  ;;  %v1780_v14 = vsel %vm1405_vm4, %v1738_v57, 0.0 }
 0x550   :  { %v1706_v61 = vmax.f32 %v1600_v58, 0.0  ;;  %v2577_v62 = vpop.f32.mrb[30].mxu0  ;;  %v1777_v63 = vsel %vm1405_vm4, %v1737_v59, 0.0 }
 0x551   :  { %v1615_v1 = vadd.f32 %v2577_v62, %v3215_v30  ;;  %v1609_v3 = vpop.f32.mrb[31].mxu0  ;;  %1778 = vadd.xlane.f32.xlu1 %v1777_v63  ;;  %1775 = vadd.xlane.f32.xlu0 %v1774_v0  ;;  %v1740_v4 = vmul.f32 %v3370_v20, %v1707_v60 }
 0x552   :  { %v1610_v5 = vadd.f32 %v1609_v3, %v3215_v30  ;;  %v1739_v7 = vmul.f32 %v3370_v20, %v1706_v61 }
 0x553   :  { %v1709_v8 = vmax.f32 %v1615_v1, 0.0  ;;  %v1786_v24 = vsel %vm1405_vm4, %v1740_v4, 0.0 }
 0x554   :  { %v1708_v10 = vmax.f32 %v1610_v5, 0.0  ;;  %v2580_v11 = vpop.f32.mrb[32].mxu0  ;;  %v1783_v13 = vsel %vm1405_vm4, %v1739_v7, 0.0 }
 0x555   :  { %v1625_v15 = vadd.f32 %v2580_v11, %v3215_v30  ;;  %v1619_v16 = vpop.f32.mrb[33].mxu0  ;;  %1784 = vadd.xlane.f32.xlu1 %v1783_v13  ;;  %1781 = vadd.xlane.f32.xlu0 %v1780_v14  ;;  %v1742_v17 = vmul.f32 %v3370_v20, %v1709_v8 }
 0x556   :  { %v1620_v18 = vadd.f32 %v1619_v16, %v3215_v30  ;;  %v1741_v43 = vmul.f32 %v3370_v20, %v1708_v10 }
 0x557   :  { %v1711_v19 = vmax.f32 %v1625_v15, 0.0  ;;  %v1792_v12 = vsel %vm1405_vm4, %v1742_v17, 0.0 }
 0x558   :  { %v1710_v21 = vmax.f32 %v1620_v18, 0.0  ;;  %v2583_v22 = vpop.f32.mrb[34].mxu0  ;;  %v1789_v23 = vsel %vm1405_vm4, %v1741_v43, 0.0 }
 0x559   :  { %v1635_v25 = vadd.f32 %v2583_v22, %v3215_v30  ;;  %v1629_v26 = vpop.f32.mrb[35].mxu0  ;;  %1790 = vadd.xlane.f32.xlu1 %v1789_v23  ;;  %1787 = vadd.xlane.f32.xlu0 %v1786_v24  ;;  %v1744_v27 = vmul.f32 %v3370_v20, %v1711_v19 }
 0x55a   :  { %v1630_v28 = vadd.f32 %v1629_v26, %v3215_v30  ;;  %v1743_v29 = vmul.f32 %v3370_v20, %v1710_v21 }
 0x55b   :  { %v1713_v31 = vmax.f32 %v1635_v25, 0.0  ;;  %v1798_v39 = vsel %vm1405_vm4, %v1744_v27, 0.0 }
 0x55c   :  { %v1712_v2 = vmax.f32 %v1630_v28, 0.0  ;;  %v2586_v32 = vpop.f32.mrb[36].mxu0  ;;  %v1795_v6 = vsel %vm1405_vm4, %v1743_v29, 0.0 }
 0x55d   :  { %v1645_v33 = vadd.f32 %v2586_v32, %v3215_v30  ;;  %v1639_v34 = vpop.f32.mrb[37].mxu0  ;;  %1796 = vadd.xlane.f32.xlu1 %v1795_v6  ;;  %1793 = vadd.xlane.f32.xlu0 %v1792_v12  ;;  %v1746_v35 = vmul.f32 %v3370_v20, %v1713_v31 }
 0x55e   :  { %v1640_v36 = vadd.f32 %v1639_v34, %v3215_v30  ;;  %v1745_v37 = vmul.f32 %v3370_v20, %v1712_v2 }
 0x55f   :  { %v1715_v38 = vmax.f32 %v1645_v33, 0.0  ;;  %v1804_v55 = vsel %vm1405_vm4, %v1746_v35, 0.0 }
 0x560   :  { %v1714_v44 = vmax.f32 %v1640_v36, 0.0  ;;  %v2589_v45 = vpop.f32.mrb[38].mxu0  ;;  %v1801_v46 = vsel %vm1405_vm4, %v1745_v37, 0.0 }
 0x561   :  { %v1655_v40 = vadd.f32 %v2589_v45, %v3215_v30  ;;  %v1649_v47 = vpop.f32.mrb[39].mxu0  ;;  %1802 = vadd.xlane.f32.xlu1 %v1801_v46  ;;  %1799 = vadd.xlane.f32.xlu0 %v1798_v39  ;;  %v1748_v48 = vmul.f32 %v3370_v20, %v1715_v38  ;;  %v2819_v45 = vmov 0.0|0.0  }
 0x562   :  { %v1650_v49 = vadd.f32 %v1649_v47, %v3215_v30  ;;  %v1747_v50 = vmul.f32 %v3370_v20, %v1714_v44  ;;  %2638 = vmatprep.subr.bf16.mxu0 %v2819_v45 }
 0x563   :  { %v1717_v51 = vmax.f32 %v1655_v40, 0.0  ;;  %v1810_v63 = vsel %vm1405_vm4, %v1748_v48, 0.0 }
 0x564   :  { %v1716_v52 = vmax.f32 %v1650_v49, 0.0  ;;  %v2592_v53 = vpop.f32.mrb[40].mxu0  ;;  %v1807_v54 = vsel %vm1405_vm4, %v1747_v50, 0.0 }
 0x565   :  { %v1665_v41 = vadd.f32 %v2592_v53, %v3215_v30  ;;  %v1659_v42 = vpop.f32.mrb[41].mxu0  ;;  %1808 = vadd.xlane.f32.xlu1 %v1807_v54  ;;  %1805 = vadd.xlane.f32.xlu0 %v1804_v55  ;;  %v1750_v56 = vmul.f32 %v3370_v20, %v1717_v51 }
 0x566   :  { %v1660_v57 = vadd.f32 %v1659_v42, %v3215_v30  ;;  %v1749_v58 = vmul.f32 %v3370_v20, %v1716_v52 }
 0x567   :  { %v1719_v59 = vmax.f32 %v1665_v41, 0.0  ;;  %v1816_v13 = vsel %vm1405_vm4, %v1750_v56, 0.0 }
 0x568   :  { %v1718_v60 = vmax.f32 %v1660_v57, 0.0  ;;  %v2595_v61 = vpop.f32.mrb[42].mxu0  ;;  %v1813_v62 = vsel %vm1405_vm4, %v1749_v58, 0.0 }
 0x569   :  { %v1675_v0 = vadd.f32 %v2595_v61, %v3215_v30  ;;  %v1669_v1 = vpop.f32.mrb[43].mxu0  ;;  %1814 = vadd.xlane.f32.xlu1 %v1813_v62  ;;  %1811 = vadd.xlane.f32.xlu0 %v1810_v63  ;;  %v1752_v3 = vmul.f32 %v3370_v20, %v1719_v59 }
 0x56a   :  { %v1670_v4 = vadd.f32 %v1669_v1, %v3215_v30  ;;  %v1751_v5 = vmul.f32 %v3370_v20, %v1718_v60 }
 0x56b   :  { %v1721_v7 = vmax.f32 %v1675_v0, 0.0  ;;  %v1822_v23 = vsel %vm1405_vm4, %v1752_v3, 0.0 }
 0x56c   :  { %v1720_v8 = vmax.f32 %v1670_v4, 0.0  ;;  %v2598_v10 = vpop.f32.mrb[44].mxu0  ;;  %v1819_v11 = vsel %vm1405_vm4, %v1751_v5, 0.0 }
 0x56d   :  { %v1685_v14 = vadd.f32 %v2598_v10, %v3215_v30  ;;  %v1679_v15 = vpop.f32.mrb[45].mxu0  ;;  %1820 = vadd.xlane.f32.xlu1 %v1819_v11  ;;  %1817 = vadd.xlane.f32.xlu0 %v1816_v13  ;;  %v1754_v16 = vmul.f32 %v3370_v20, %v1721_v7 }
 0x56e   :  { %v1680_v17 = vadd.f32 %v1679_v15, %v3215_v30  ;;  %v1753_v18 = vmul.f32 %v3370_v20, %v1720_v8 }
 0x56f   :  { %v1723_v43 = vmax.f32 %v1685_v14, 0.0  ;;  %v1828_v32 = vsel %vm1405_vm4, %v1754_v16, 0.0 }
 0x570   :  { %v1722_v19 = vmax.f32 %v1680_v17, 0.0  ;;  %v2601_v21 = vpop.f32.mrb[46].mxu0  ;;  %v1825_v22 = vsel %vm1405_vm4, %v1753_v18, 0.0 }
 0x571   :  { %v1695_v24 = vadd.f32 %v2601_v21, %v3215_v30  ;;  %v1689_v25 = vpop.f32.mrb[47].mxu0  ;;  %1826 = vadd.xlane.f32.xlu1 %v1825_v22  ;;  %1823 = vadd.xlane.f32.xlu0 %v1822_v23  ;;  %v1756_v26 = vmul.f32 %v3370_v20, %v1723_v43 }
 0x572   :  { %v1690_v27 = vadd.f32 %v1689_v25, %v3215_v30  ;;  %v1755_v28 = vmul.f32 %v3370_v20, %v1722_v19 }
 0x573   :  { %v1725_v29 = vmax.f32 %v1695_v24, 0.0  ;;  %v1834_v34 = vsel %vm1405_vm4, %v1756_v26, 0.0 }
 0x574   :  { %v1724_v31 = vmax.f32 %v1690_v27, 0.0  ;;  %v1831_v2 = vsel %vm1405_vm4, %v1755_v28, 0.0 }
 0x575   :  { %1832 = vadd.xlane.f32.xlu1 %v1831_v2  ;;  %1829 = vadd.xlane.f32.xlu0 %v1828_v32  ;;  %v1758_v6 = vmul.f32 %v3370_v20, %v1725_v29  ;;  %v3488_v32 = vld [vmem:[%s3613_s11] sm:$0xff] }
 0x576   :  { %v1757_v12 = vmul.f32 %v3370_v20, %v1724_v31 }
 0x577   :  { %v1840_v30 = vsel %vm1405_vm4, %v1758_v6, 0.0  ;;  %v2073_v6 = vcombine.high %v3488_v32, %v3488_v32 }
 0x578   :  { %v1837_v33 = vsel %vm1405_vm4, %v1757_v12, 0.0  ;;  %v1877_v12 = vld [vmem:[%s3614_s12 + $0x8] sm:$0xff] }
 0x579   :  { %1838 = vadd.xlane.f32.xlu1 %v1837_v33  ;;  %1835 = vadd.xlane.f32.xlu0 %v1834_v34  ;;  %v1876_v33 = vld [vmem:[%s3614_s12] sm:$0xff] }
 0x57a   :  { %2278 = vmatprep.mubr.msk.f32.mxu0 %vm2074_vm5, %v2073_v6 }
 0x57d   :  { %1841 = vadd.xlane.f32.xlu0 %v1840_v30 }
 0x5d1   :  { %v1764_v35 = vpop.xlane.xlu1 %1763 }
 0x5d2   :  { %v1848_v36 = vadd.f32 %v2936_v9, %v1764_v35  ;;  %v1761_v37 = vpop.xlane.xlu0 %1760 }
 0x5d3   :  { %v1847_v38 = vadd.f32 %v2936_v9, %v1761_v37 }
 0x5d4   :  { %1911 = vperm.xlu0 %2723, %v1848_v36  }
 0x5d5   :  { %1906 = vperm.xlu1 %2724, %v1847_v38   ;;  %v1879_v38 = vld [vmem:[%s3614_s12 + $0x18] sm:$0xff] }
 0x5d6   :  { %v1770_v44 = vpop.xlane.xlu0 %1769 }
 0x5d7   :  { %v1850_v20 = vadd.f32 %v2936_v9, %v1770_v44  ;;  %v1878_v44 = vld [vmem:[%s3614_s12 + $0x10] sm:$0xff] }
 0x5d9   :  { %1921 = vperm.xlu1 %2724, %v1850_v20  }
 0x5da   :  { %v1773_v46 = vpop.xlane.xlu1 %1772  ;;  %v1767_v39 = vpop.xlane.xlu0 %1766 }
 0x5db   :  { %v1851_v40 = vadd.f32 %v2936_v9, %v1773_v46  ;;  %v1849_v47 = vadd.f32 %v2936_v9, %v1767_v39 }
 0x5dd   :  { %1926 = vperm.xlu0 %2723, %v1851_v40   ;;  %1916 = vperm.xlu1 %2724, %v1849_v47   ;;  %v1880_v47 = vld [vmem:[%s3614_s12 + $0x20] sm:$0xff] }
 0x5de   :  { %v1779_v48 = vpop.xlane.xlu1 %1778  ;;  %v1776_v49 = vpop.xlane.xlu0 %1775 }
 0x5df   :  { %v1853_v50 = vadd.f32 %v2936_v9, %v1779_v48  ;;  %v1852_v51 = vadd.f32 %v2936_v9, %v1776_v49  ;;  %v1881_v48 = vld [vmem:[%s3614_s12 + $0x28] sm:$0xff] }
 0x5e1   :  { %1936 = vperm.xlu0 %2723, %v1853_v50   ;;  %1931 = vperm.xlu1 %2724, %v1852_v51  }
 0x5e2   :  { %v1785_v52 = vpop.xlane.xlu1 %1784  ;;  %v1782_v53 = vpop.xlane.xlu0 %1781 }
 0x5e3   :  { %v1855_v54 = vadd.f32 %v2936_v9, %v1785_v52  ;;  %v1854_v55 = vadd.f32 %v2936_v9, %v1782_v53 }
 0x5e5   :  { %1946 = vperm.xlu0 %2723, %v1855_v54   ;;  %1941 = vperm.xlu1 %2724, %v1854_v55   ;;  %v1882_v54 = vld [vmem:[%s3614_s12 + $0x30] sm:$0xff]  ;;  %v1883_v55 = vld [vmem:[%s3614_s12 + $0x38] sm:$0xff] }
 0x5e6   :  { %v1791_v41 = vpop.xlane.xlu1 %1790  ;;  %v1788_v42 = vpop.xlane.xlu0 %1787 }
 0x5e7   :  { %v1857_v56 = vadd.f32 %v2936_v9, %v1791_v41  ;;  %v1856_v57 = vadd.f32 %v2936_v9, %v1788_v42 }
 0x5e9   :  { %1956 = vperm.xlu0 %2723, %v1857_v56   ;;  %1951 = vperm.xlu1 %2724, %v1856_v57  }
 0x5ea   :  { %v1797_v58 = vpop.xlane.xlu1 %1796  ;;  %v1794_v59 = vpop.xlane.xlu0 %1793 }
 0x5eb   :  { %v1859_v60 = vadd.f32 %v2936_v9, %v1797_v58  ;;  %v1858_v61 = vadd.f32 %v2936_v9, %v1794_v59  ;;  %v1884_v59 = vld [vmem:[%s3614_s12 + $0x40] sm:$0xff] }
 0x5ed   :  { %1966 = vperm.xlu0 %2723, %v1859_v60   ;;  %1961 = vperm.xlu1 %2724, %v1858_v61   ;;  %v1885_v60 = vld [vmem:[%s3614_s12 + $0x48] sm:$0xff] }
 0x5ee   :  { %v1803_v62 = vpop.xlane.xlu1 %1802  ;;  %v1800_v63 = vpop.xlane.xlu0 %1799 }
 0x5ef   :  { %v1861_v0 = vadd.f32 %v2936_v9, %v1803_v62  ;;  %v1860_v1 = vadd.f32 %v2936_v9, %v1800_v63 }
 0x5f1   :  { %1976 = vperm.xlu0 %2723, %v1861_v0   ;;  %1971 = vperm.xlu1 %2724, %v1860_v1  }
 0x5f2   :  { %v1809_v3 = vpop.xlane.xlu1 %1808  ;;  %v1806_v4 = vpop.xlane.xlu0 %1805 }
 0x5f3   :  { %v1863_v5 = vadd.f32 %v2936_v9, %v1809_v3  ;;  %v1862_v7 = vadd.f32 %v2936_v9, %v1806_v4  ;;  %v1886_v3 = vld [vmem:[%s3614_s12 + $0x50] sm:$0xff]  ;;  %v1887_v4 = vld [vmem:[%s3614_s12 + $0x58] sm:$0xff] }
 0x5f5   :  { %1986 = vperm.xlu0 %2723, %v1863_v5   ;;  %1981 = vperm.xlu1 %2724, %v1862_v7  }
 0x5f6   :  { %v1815_v8 = vpop.xlane.xlu1 %1814  ;;  %v1812_v10 = vpop.xlane.xlu0 %1811 }
 0x5f7   :  { %v1865_v11 = vadd.f32 %v2936_v9, %v1815_v8  ;;  %v1864_v13 = vadd.f32 %v2936_v9, %v1812_v10 }
 0x5f9   :  { %1996 = vperm.xlu0 %2723, %v1865_v11   ;;  %1991 = vperm.xlu1 %2724, %v1864_v13   ;;  %v1888_v13 = vld [vmem:[%s3614_s12 + $0x60] sm:$0xff] }
 0x5fa   :  { %v1821_v14 = vpop.xlane.xlu1 %1820  ;;  %v1818_v15 = vpop.xlane.xlu0 %1817 }
 0x5fb   :  { %v1867_v16 = vadd.f32 %v2936_v9, %v1821_v14  ;;  %v1866_v17 = vadd.f32 %v2936_v9, %v1818_v15  ;;  %v1889_v14 = vld [vmem:[%s3614_s12 + $0x68] sm:$0xff] }
 0x5fd   :  { %2006 = vperm.xlu0 %2723, %v1867_v16   ;;  %2001 = vperm.xlu1 %2724, %v1866_v17  }
 0x5fe   :  { %v1827_v18 = vpop.xlane.xlu1 %1826  ;;  %v1824_v43 = vpop.xlane.xlu0 %1823 }
 0x5ff   :  { %v1869_v19 = vadd.f32 %v2936_v9, %v1827_v18  ;;  %v1868_v21 = vadd.f32 %v2936_v9, %v1824_v43 }
 0x601   :  { %2016 = vperm.xlu0 %2723, %v1869_v19   ;;  %2011 = vperm.xlu1 %2724, %v1868_v21   ;;  %v1890_v19 = vld [vmem:[%s3614_s12 + $0x70] sm:$0xff]  ;;  %v1891_v21 = vld [vmem:[%s3614_s12 + $0x78] sm:$0xff] }
 0x602   :  { %v1833_v22 = vpop.xlane.xlu1 %1832  ;;  %v1830_v23 = vpop.xlane.xlu0 %1829 }
 0x603   :  { %v1871_v24 = vadd.f32 %v2936_v9, %v1833_v22  ;;  %v1870_v25 = vadd.f32 %v2936_v9, %v1830_v23 }
 0x605   :  { %2026 = vperm.xlu0 %2723, %v1871_v24   ;;  %2021 = vperm.xlu1 %2724, %v1870_v25  }
 0x606   :  { %v1839_v26 = vpop.xlane.xlu1 %1838  ;;  %v1836_v27 = vpop.xlane.xlu0 %1835 }
 0x607   :  { %v1873_v28 = vadd.f32 %v2936_v9, %v1839_v26  ;;  %v1872_v29 = vadd.f32 %v2936_v9, %v1836_v27  ;;  %v1892_v27 = vld [vmem:[%s3614_s12 + $0x80] sm:$0xff] }
 0x609   :  { %2036 = vperm.xlu0 %2723, %v1873_v28   ;;  %2031 = vperm.xlu1 %2724, %v1872_v29   ;;  %v1893_v28 = vld [vmem:[%s3614_s12 + $0x88] sm:$0xff] }
 0x60a   :  { %v1842_v31 = vpop.xlane.xlu0 %1841 }
 0x60b   :  { %v1874_v2 = vadd.f32 %v2936_v9, %v1842_v31 }
 0x60d   :  { %2041 = vperm.xlu1 %2724, %v1874_v2  }
 0x653   :  { %v1912_v9 = vpop.permute.xlu0 %1911 }
 0x654   :  { %v2045_v34 = vmul.f32 %v1912_v9, %v1877_v12  ;;  %v1907_v30 = vpop.permute.xlu1 %1906  ;;  %v1895_v9 = vld [vmem:[%s3614_s12 + $0x98] sm:$0xff] }
 0x655   :  { %v2044_v35 = vmul.f32 %v1907_v30, %v1876_v33  ;;  %v1894_v33 = vld [vmem:[%s3614_s12 + $0x90] sm:$0xff] }
 0x657   :  { %v2639_v36 = vpack.c.bf16 %v2045_v34, %v2044_v35 }
 0x658   :  { %v1922_v37 = vpop.permute.xlu1 %1921 }
 0x659   :  { %2640 = vmatpush1.bf16.msra.mxu0 %v2639_v36  ;;  %v2047_v39 = vmul.f32 %v1922_v37, %v1879_v38  ;;  %v1896_v38 = vld [vmem:[%s3614_s12 + $0xa0] sm:$0xff] }
 0x65a   :  { %2641 = vmatprep.subr.bf16.mxu0 %v2819_v45 }
 0x65c   :  { %v1917_v20 = vpop.permute.xlu1 %1916  ;;  %v1927_v46 = vpop.permute.xlu0 %1926 }
 0x65d   :  { %v2046_v40 = vmul.f32 %v1917_v20, %v1878_v44  ;;  %v2048_v52 = vmul.f32 %v1927_v46, %v1880_v47  ;;  %v1897_v44 = vld [vmem:[%s3614_s12 + $0xa8] sm:$0xff] }
 0x65f   :  { %v2642_v49 = vpack.c.bf16 %v2047_v39, %v2046_v40 }
 0x660   :  { %v1932_v50 = vpop.permute.xlu1 %1931  ;;  %v1937_v51 = vpop.permute.xlu0 %1936 }
 0x661   :  { %v2049_v53 = vmul.f32 %v1932_v50, %v1881_v48  ;;  %2643 = vmatpush1.bf16.msra.mxu0 %v2642_v49  ;;  %v2050_v57 = vmul.f32 %v1937_v51, %v1882_v54  ;;  %v1898_v48 = vld [vmem:[%s3614_s12 + $0xb0] sm:$0xff]  ;;  %v1899_v49 = vld [vmem:[%s3614_s12 + $0xb8] sm:$0xff] }
 0x662   :  { %2644 = vmatprep.subr.bf16.mxu0 %v2819_v45 }
 0x663   :  { %v2645_v41 = vpack.c.bf16 %v2049_v53, %v2048_v52 }
 0x664   :  { %v1942_v42 = vpop.permute.xlu1 %1941  ;;  %v1947_v56 = vpop.permute.xlu0 %1946 }
 0x665   :  { %v2051_v58 = vmul.f32 %v1942_v42, %v1883_v55  ;;  %2646 = vmatpush1.bf16.msra.mxu0 %v2645_v41  ;;  %v2052_v0 = vmul.f32 %v1947_v56, %v1884_v59  ;;  %v1900_v55 = vld [vmem:[%s3614_s12 + $0xc0] sm:$0xff]  ;;  %v1901_v41 = vld [vmem:[%s3614_s12 + $0xc8] sm:$0xff]  ;;  %v1902_v59 = vld [vmem:[%s3614_s12 + $0xd0] sm:$0xff] }
 0x666   :  { %2647 = vmatprep.subr.bf16.mxu0 %v2819_v45 }
 0x667   :  { %v2648_v61 = vpack.c.bf16 %v2051_v58, %v2050_v57 }
 0x668   :  { %v1952_v62 = vpop.permute.xlu1 %1951  ;;  %v1957_v63 = vpop.permute.xlu0 %1956 }
 0x669   :  { %v2053_v1 = vmul.f32 %v1952_v62, %v1885_v60  ;;  %2649 = vmatpush1.bf16.msra.mxu0 %v2648_v61  ;;  %v2054_v10 = vmul.f32 %v1957_v63, %v1886_v3  ;;  %v1903_v61 = vld [vmem:[%s3614_s12 + $0xd8] sm:$0xff]  ;;  %s2786_s12 = scalar_lea.vmem %s2156_s14, 64 }
 0x66a   :  { %2650 = vmatprep.subr.bf16.mxu0 %v2819_v45  ;;  %p2787_p2 = scmp.ne.s32.totalorder %s2156_s14, %s2786_s12  ;;  %p2792_p4 = scmp.lt.s32.totalorder %s2786_s12, %s2786_s12 }
 0x66b   :  { %v2651_v5 = vpack.c.bf16 %v2053_v1, %v2052_v0 }
 0x66c   :  { %v1962_v7 = vpop.permute.xlu1 %1961  ;;  %v1967_v8 = vpop.permute.xlu0 %1966  ;;  %p2793_p5 = por %p2792_p4, %p2791_p3 }
 0x66d   :  { %v2055_v11 = vmul.f32 %v1962_v7, %v1887_v4  ;;  %2652 = vmatpush1.bf16.msra.mxu0 %v2651_v5  ;;  %v2056_v18 = vmul.f32 %v1967_v8, %v1888_v13 }
 0x66e   :  { %2653 = vmatprep.subr.bf16.mxu0 %v2819_v45  ;;  %p2794_p6 = pnand %p2793_p5, %p2787_p2 }
 0x66f   :  { %v2654_v15 = vpack.c.bf16 %v2055_v11, %v2054_v10 }
 0x670   :  { %v1972_v16 = vpop.permute.xlu1 %1971  ;;  %v1977_v17 = vpop.permute.xlu0 %1976 }
 0x671   :  { %v2057_v43 = vmul.f32 %v1972_v16, %v1889_v14  ;;  %2655 = vmatpush1.bf16.msra.mxu0 %v2654_v15  ;;  %v2058_v25 = vmul.f32 %v1977_v17, %v1890_v19 }
 0x672   :  { %2656 = vmatprep.subr.bf16.mxu0 %v2819_v45 }
 0x673   :  { %v2657_v22 = vpack.c.bf16 %v2057_v43, %v2056_v18 }
 0x674   :  { %v1982_v23 = vpop.permute.xlu1 %1981  ;;  %v1987_v24 = vpop.permute.xlu0 %1986 }
 0x675   :  { %v2059_v26 = vmul.f32 %v1982_v23, %v1891_v21  ;;  %2658 = vmatpush1.bf16.msra.mxu0 %v2657_v22  ;;  %v2060_v6 = vmul.f32 %v1987_v24, %v1892_v27 }
 0x676   :  { %2659 = vmatprep.subr.bf16.mxu0 %v2819_v45 }
 0x677   :  { %v2660_v29 = vpack.c.bf16 %v2059_v26, %v2058_v25 }
 0x678   :  { %v1992_v31 = vpop.permute.xlu1 %1991  ;;  %v1997_v2 = vpop.permute.xlu0 %1996 }
 0x679   :  { %v2061_v12 = vmul.f32 %v1992_v31, %v1893_v28  ;;  %2661 = vmatpush1.bf16.msra.mxu0 %v2660_v29  ;;  %v2062_v36 = vmul.f32 %v1997_v2, %v1894_v33 }
 0x67a   :  { %2662 = vmatprep.subr.bf16.mxu0 %v2819_v45 }
 0x67b   :  { %v2663_v34 = vpack.c.bf16 %v2061_v12, %v2060_v6 }
 0x67c   :  { %v2002_v30 = vpop.permute.xlu1 %2001  ;;  %v2007_v35 = vpop.permute.xlu0 %2006 }
 0x67d   :  { %v2063_v37 = vmul.f32 %v2002_v30, %v1895_v9  ;;  %2664 = vmatpush1.bf16.msra.mxu0 %v2663_v34  ;;  %v2064_v40 = vmul.f32 %v2007_v35, %v1896_v38 }
 0x67e   :  { %2665 = vmatprep.subr.bf16.mxu0 %v2819_v45 }
 0x67f   :  { %v2666_v20 = vpack.c.bf16 %v2063_v37, %v2062_v36 }
 0x680   :  { %v2012_v46 = vpop.permute.xlu1 %2011  ;;  %v2017_v39 = vpop.permute.xlu0 %2016 }
 0x681   :  { %v2065_v47 = vmul.f32 %v2012_v46, %v1897_v44  ;;  %2667 = vmatpush1.bf16.msra.mxu0 %v2666_v20  ;;  %v2066_v53 = vmul.f32 %v2017_v39, %v1898_v48 }
 0x682   :  { %2668 = vmatprep.subr.bf16.mxu0 %v2819_v45 }
 0x683   :  { %v2669_v50 = vpack.c.bf16 %v2065_v47, %v2064_v40 }
 0x684   :  { %v2022_v51 = vpop.permute.xlu1 %2021  ;;  %v2027_v52 = vpop.permute.xlu0 %2026 }
 0x685   :  { %v2067_v54 = vmul.f32 %v2022_v51, %v1899_v49  ;;  %2670 = vmatpush1.bf16.msra.mxu0 %v2669_v50  ;;  %v2068_v57 = vmul.f32 %v2027_v52, %v1900_v55 }
 0x686   :  { %2671 = vmatprep.subr.bf16.mxu0 %v2819_v45 }
 0x687   :  { %v2672_v42 = vpack.c.bf16 %v2067_v54, %v2066_v53 }
 0x688   :  { %v2032_v56 = vpop.permute.xlu1 %2031  ;;  %v2037_v60 = vpop.permute.xlu0 %2036 }
 0x689   :  { %v2069_v58 = vmul.f32 %v2032_v56, %v1901_v41  ;;  %2673 = vmatpush1.bf16.msra.mxu0 %v2672_v42  ;;  %v2070_v0 = vmul.f32 %v2037_v60, %v1902_v59 }
 0x68a   :  { %2674 = vmatprep.subr.bf16.mxu0 %v2819_v45 }
 0x68b   :  { %v2675_v62 = vpack.c.bf16 %v2069_v58, %v2068_v57 }
 0x68c   :  { %v2042_v63 = vpop.permute.xlu1 %2041 }
 0x68d   :  { %v2071_v1 = vmul.f32 %v2042_v63, %v1903_v61  ;;  %2676 = vmatpush1.bf16.msra.mxu0 %v2675_v62 }
 0x68e   :  { %2677 = vmatprep.subr.bf16.mxu0 %v2819_v45 }
 0x68f   :  { %v2678_v3 = vpack.c.bf16 %v2071_v1, %v2070_v0 }
 0x691   :  { %2679 = vmatpush1.bf16.msra.mxu0 %v2678_v3 }
 0x694   :  { %2142 = vmatmul.mubr.f32.vlgmr.msra.gmra.mrb[48].mxu0 %v3488_v32 }
 0x767   :  { %v2143_v4 = vpop.f32.mrb[48].mxu0 }
 0x768   :  { %v2145_v5 = vpop.f32.mrb[49].mxu0  ;;  %2148 = vst.msk [vmem:[#allocation7] sm:$0xf] %vm2147_vm6, %v2143_v4 }
 0x769   :  { %2797 = shalt.err (!%p2794_p6)
}
 0x76a   :  { %s2798_s4 = scalar_lea.hbm %s3615_s13, 64 }
 0x76b   :  { %p2799_p7 = scmp.ne.s32.totalorder %s3615_s13, %s2798_s4  ;;  %p2802_p8 = scmp.lt.u32.totalorder %s2798_s4, %s3615_s13 }
 0x76d   :  { %p2804_p9 = pnand %p2802_p8, %p2799_p7 }
 0x76f   :  { %2807 = shalt.err (!%p2804_p9)
}
 0x770   :  { %2158 = dma.vmem_to_hbm [thread:$0]  %s2156_s14, 64, %s3615_s13, [#allocation4]  }
 0x771   :  { %2812 = dma.done.wait [#allocation4], 64  }
 0x772   :  { %2813 = vsyncadd [#allocation4], 4294967232 }
 0x773   :  { %2162 = vsyncpa [#allocation3], 1 }
 0x774   :  { %2163 = vsyncpa [#allocation6], 1 }
 0x775   :  { %2164 = vsyncpa [#allocation4], 1 }

</bundles_post_ra>
